<compile_context>
chip_gen: v6e
topology: v6e:2x2x1
jax: 0.10.0
libtpu: 0.0.40
codegen_flags: <defaults>
</compile_context>

<pallas_src>
import functools

import jax
import jax.numpy as jnp
from jax.experimental import pallas as pl
from jax.experimental.pallas import tpu as pltpu

_BF16 = jnp.bfloat16
_F32 = jnp.float32


def _modulated_layernorm(v, scale, shift, eps=1e-6):
    """LayerNorm (no affine, biased variance, eps=1e-6) fused with adaLN modulate()."""
    mu = jnp.mean(v, axis=-1, keepdims=True)
    var = jnp.mean(jnp.square(v - mu), axis=-1, keepdims=True)
    inv = jax.lax.rsqrt(var + eps)
    return (v - mu) * (inv * (1.0 + scale)) + shift


# ------------------------------ pass 1: K/V projection ------------------------------
def kv_proj_kernel(x_ref, mod_ref, kvw_ref, kvb_ref, kt_ref, v_ref, *, num_heads):
    """Modulated-LN + fused K|V projection for one KV chunk of one batch element.

    Writes K pre-transposed (nh, hd, TKV) and V (nh, TKV, hd), both bf16, paying
    the transpose once here instead of once per query tile.
    """
    TKV, H = x_ref.shape[1], x_ref.shape[2]
    nh = num_heads
    hd = H // nh

    mod = mod_ref[0].astype(_F32)                             # (1, 6H)
    shift_msa = mod[:, 0 * H:1 * H]
    scale_msa = mod[:, 1 * H:2 * H]

    xf = x_ref[0].astype(_F32)                                # (TKV, H)
    xn = _modulated_layernorm(xf, scale_msa, shift_msa).astype(_BF16)
    kv = jnp.dot(xn, kvw_ref[...], preferred_element_type=_F32) + kvb_ref[...]
    k = kv[:, :H].reshape(TKV, nh, hd)
    v = kv[:, H:].reshape(TKV, nh, hd)
    kt_ref[0] = jnp.transpose(k, (1, 2, 0)).astype(_BF16)     # (nh, hd, TKV)
    v_ref[0] = jnp.transpose(v, (1, 0, 2)).astype(_BF16)      # (nh, TKV, hd)


# --------------------------- pass 2: attention + MLP per tile ---------------------------
def dit_attn_mlp_kernel(x_ref, mod_ref, kt_ref, v_ref,
                        qw_ref, qb_ref, ow_ref, ob_ref,
                        w1_ref, b1_ref, w2_ref, b2_ref,
                        out_ref, *, num_heads, approx_reciprocal):
    TN, H = x_ref.shape[1], x_ref.shape[2]
    nh = num_heads
    hd = H // nh
    TKV = kt_ref.shape[3]                 # KV chunk length
    n_chunks = kt_ref.shape[1] // nh      # number of KV chunks

    mod = mod_ref[0].astype(_F32)                             # (1, 6H)
    shift_msa = mod[:, 0 * H:1 * H]
    scale_msa = mod[:, 1 * H:2 * H]
    gate_msa  = mod[:, 2 * H:3 * H]
    shift_mlp = mod[:, 3 * H:4 * H]
    scale_mlp = mod[:, 4 * H:5 * H]
    gate_mlp  = mod[:, 5 * H:6 * H]

    # ---- attention branch (query / residual path only needs this tile) ----
    x_tile = x_ref[0].astype(_F32)                            # (TN, H)
    xn1 = _modulated_layernorm(x_tile, scale_msa, shift_msa)
    # 1/sqrt(head_dim) is already folded into qw/qb.
    q = jnp.dot(xn1.astype(_BF16), qw_ref[...], preferred_element_type=_F32) + qb_ref[...]
    qh = jnp.transpose(q.reshape(TN, nh, hd), (1, 0, 2)).astype(_BF16)   # (nh, TN, hd)

    # Flash-style online softmax over KV chunks: logits temp is (nh, TN, TKV).
    def kv_step(i, carry):
        m, l, acc = carry
        h0 = pl.multiple_of(i * nh, nh)
        kt = kt_ref[0, pl.ds(h0, nh), :, :]                   # (nh, hd, TKV) bf16
        vc = v_ref[0, pl.ds(h0, nh), :, :]                    # (nh, TKV, hd) bf16
        s = jnp.einsum('hqd,hdk->hqk', qh, kt,
                       preferred_element_type=_F32)           # (nh, TN, TKV)
        m_new = jnp.maximum(m, jnp.max(s, axis=-1, keepdims=True))
        alpha = jnp.exp(m - m_new)
        p = jnp.exp(s - m_new)
        l_new = alpha * l + jnp.sum(p, axis=-1, keepdims=True)
        acc_new = alpha * acc + jnp.einsum('hqk,hkd->hqd', p.astype(_BF16), vc,
                                           preferred_element_type=_F32)
        return m_new, l_new, acc_new

    m0 = jnp.full((nh, TN, 1), -1e30, _F32)
    l0 = jnp.zeros((nh, TN, 1), _F32)
    a0 = jnp.zeros((nh, TN, hd), _F32)
    _, l, acc = jax.lax.fori_loop(0, n_chunks, kv_step, (m0, l0, a0))

    if approx_reciprocal:
        ah = acc * pl.reciprocal(l, approx=True)   # ~1e-3 rel. error vs exact division
    else:
        ah = acc / l
    attn = jnp.transpose(ah, (1, 0, 2)).reshape(TN, H)
    attn = jnp.dot(attn.astype(_BF16), ow_ref[...],
                   preferred_element_type=_F32) + ob_ref[...]
    x1 = x_tile + gate_msa * attn

    # ---- MLP branch ----
    xn2 = _modulated_layernorm(x1, scale_mlp, shift_mlp)
    h1 = jnp.dot(xn2.astype(_BF16), w1_ref[...],
                 preferred_element_type=_F32) + b1_ref[...]
    h1 = h1 * jax.nn.sigmoid(h1)                              # SiLU
    mlp = jnp.dot(h1.astype(_BF16), w2_ref[...],
                  preferred_element_type=_F32) + b2_ref[...]
    out_ref[0] = (x1 + gate_mlp * mlp).astype(out_ref.dtype)


# ------------------------------------- wrapper -------------------------------------
def _default_vmem_limit_bytes():
    try:
        cap = int(pltpu.get_tpu_info().vmem_capacity_bytes)
    except Exception:
        return 56 * 1024 * 1024            # conservative: fits every generation
    # >=16 MiB headroom below physical (v7x: 64 -> 48 MiB); <=~100 MiB on v5e/v6e.
    return int(min(cap - 16 * 1024 * 1024, 100 * 1024 * 1024))


def _resident_spec(arr, single_buffer):
    """Grid-constant block: DMA'd once and held VMEM-resident with ONE buffer."""
    idx = lambda b, n: (0,) * arr.ndim
    if single_buffer and hasattr(pl, "Buffered"):
        return pl.BlockSpec(arr.shape, idx, pipeline_mode=pl.Buffered(1))
    return pl.BlockSpec(arr.shape, idx)


def dit_block(x, c, params, num_heads, *, tile_n=256, kv_chunk=512,
              vmem_limit_bytes=None, single_buffer_weights=True,
              approx_reciprocal=True):
    """DiTBlock forward. x: (B, N, H), c: (B, T). Linear weights pre-transposed
    to (in_features, out_features); matmul weights run in bf16 (f32 accumulation)."""
    B, N, H = x.shape
    assert H % num_heads == 0
    hd = H // num_heads

    TN = min(tile_n, N)
    assert N % TN == 0, "sequence length must be divisible by the query tile"
    TKV = min(kv_chunk, N)
    assert N % TKV == 0, "sequence length must be divisible by the KV chunk"
    n_chunks = N // TKV

    if vmem_limit_bytes is None:
        vmem_limit_bytes = _default_vmem_limit_bytes()

    # adaLN modulation hoisted out of the kernels (tiny f32 XLA matmul).
    mod = jax.nn.silu(c.astype(_F32)) @ params["adaw"].astype(_F32) \
        + params["adab"].astype(_F32)
    mod = mod.reshape(B, 1, 6 * H)

    # Weight prep: bf16 matmul weights, f32 biases, q-scale folded into qw/qb.
    qkvw, qkvb = params["qkvw"], params["qkvb"]
    qscale = 1.0 / float(hd) ** 0.5
    qw = (qkvw[:, :H] * qscale).astype(_BF16)
    qb = (qkvb[:, :H] * qscale).astype(_F32)
    kvw = qkvw[:, H:].astype(_BF16)                  # fused K|V projection (H, 2H)
    kvb = qkvb[:, H:].astype(_F32)
    ow, ob = params["ow"].astype(_BF16), params["ob"].astype(_F32)
    w1, b1 = params["w1"].astype(_BF16), params["b1"].astype(_F32)
    w2, b2 = params["w2"].astype(_BF16), params["b2"].astype(_F32)

    cparams = pltpu.CompilerParams(
        # No scratch / accumulator dependency in either kernel -> both axes are
        # shardable across TensorCores (v7x has 2 TCs per chip).
        dimension_semantics=("parallel", "parallel"),
        vmem_limit_bytes=vmem_limit_bytes,
    )
    sb = single_buffer_weights
    nh = num_heads

    # ---- pass 1: K/V projection, chunked over the sequence ----
    kt, v = pl.pallas_call(
        functools.partial(kv_proj_kernel, num_heads=nh),
        out_shape=(
            jax.ShapeDtypeStruct((B, n_chunks * nh, hd, TKV), _BF16),   # K^T, chunked
            jax.ShapeDtypeStruct((B, n_chunks * nh, TKV, hd), _BF16),   # V,  chunked
        ),
        grid=(B, n_chunks),
        in_specs=[
            pl.BlockSpec((1, TKV, H), lambda b, n: (b, n, 0)),
            pl.BlockSpec((1, 1, 6 * H), lambda b, n: (b, 0, 0)),
            _resident_spec(kvw, sb),
            _resident_spec(kvb, sb),
        ],
        out_specs=[
            pl.BlockSpec((1, nh, hd, TKV), lambda b, n: (b, n, 0, 0)),
            pl.BlockSpec((1, nh, TKV, hd), lambda b, n: (b, n, 0, 0)),
        ],
        compiler_params=cparams,
    )(x, mod, kvw, kvb)

    # ---- pass 2: attention (flash softmax over cached K/V) + MLP, per query tile ----
    weights = [qw, qb, ow, ob, w1, b1, w2, b2]
    kernel = functools.partial(dit_attn_mlp_kernel, num_heads=nh,
                               approx_reciprocal=approx_reciprocal)
    return pl.pallas_call(
        kernel,
        out_shape=jax.ShapeDtypeStruct((B, N, H), x.dtype),
        grid=(B, N // TN),
        in_specs=[
            pl.BlockSpec((1, TN, H), lambda b, n: (b, n, 0)),             # query/residual tile
            pl.BlockSpec((1, 1, 6 * H), lambda b, n: (b, 0, 0)),          # adaLN mod
            pl.BlockSpec((1, n_chunks * nh, hd, TKV), lambda b, n: (b, 0, 0, 0)),  # K^T (per b)
            pl.BlockSpec((1, n_chunks * nh, TKV, hd), lambda b, n: (b, 0, 0, 0)),  # V   (per b)
        ] + [_resident_spec(w, sb) for w in weights],
        out_specs=pl.BlockSpec((1, TN, H), lambda b, n: (b, n, 0)),
        compiler_params=cparams,
    )(x, mod, kt, v, *weights)


# ------------------------------------ reference ------------------------------------
def dit_block_ref(x, c, p, num_heads):
    """Pure-JAX reference, identical semantics to the PyTorch module."""
    B, N, H = x.shape
    hd = H // num_heads
    eps = 1e-6

    def ln(v):
        mu = v.mean(-1, keepdims=True)
        var = ((v - mu) ** 2).mean(-1, keepdims=True)
        return (v - mu) / jnp.sqrt(var + eps)

    mod = jax.nn.silu(c) @ p["adaw"] + p["adab"]
    sm, scm, gm, smlp, sclp, gmlp = jnp.split(mod, 6, axis=-1)

    xn1 = ln(x) * (1 + scm[:, None, :]) + sm[:, None, :]
    qkv = xn1 @ p["qkvw"] + p["qkvb"]
    q, k, v = jnp.split(qkv, 3, axis=-1)
    q = q.reshape(B, N, num_heads, hd).transpose(0, 2, 1, 3)
    k = k.reshape(B, N, num_heads, hd).transpose(0, 2, 1, 3)
    v = v.reshape(B, N, num_heads, hd).transpose(0, 2, 1, 3)
    s = jnp.einsum('bhqd,bhkd->bhqk', q, k) / jnp.sqrt(float(hd))
    a = jnp.einsum('bhqk,bhkd->bhqd', jax.nn.softmax(s, axis=-1), v)
    a = a.transpose(0, 2, 1, 3).reshape(B, N, H)
    a = a @ p["ow"] + p["ob"]
    x = x + gm[:, None, :] * a

    xn2 = ln(x) * (1 + sclp[:, None, :]) + smlp[:, None, :]
    mlp = jax.nn.silu(xn2 @ p["w1"] + p["b1"]) @ p["w2"] + p["b2"]
    return x + gmlp[:, None, :] * mlp


if __name__ == "__main__":
    B, N, H, T, num_heads = 2, 8, 32, 32, 4
    MH = int(H * 4.0)

    key = jax.random.PRNGKey(0)
    keys = jax.random.split(key, 13)
    x = jax.random.normal(keys[0], (B, N, H), jnp.float32)
    c = jax.random.normal(keys[1], (B, T), jnp.float32)

    wscale = 0.1
    params = {
        "adaw": jax.random.normal(keys[2], (T, 6 * H), jnp.float32) * wscale,
        "adab": jax.random.normal(keys[3], (1, 6 * H), jnp.float32) * wscale,
        "qkvw": jax.random.normal(keys[4], (H, 3 * H), jnp.float32) * wscale,
        "qkvb": jax.random.normal(keys[5], (1, 3 * H), jnp.float32) * wscale,
        "ow":   jax.random.normal(keys[6], (H, H), jnp.float32) * wscale,
        "ob":   jax.random.normal(keys[7], (1, H), jnp.float32) * wscale,
        "w1":   jax.random.normal(keys[8], (H, MH), jnp.float32) * wscale,
        "b1":   jax.random.normal(keys[9], (1, MH), jnp.float32) * wscale,
        "w2":   jax.random.normal(keys[10], (MH, H), jnp.float32) * wscale,
        "b2":   jax.random.normal(keys[11], (1, H), jnp.float32) * wscale,
    }

    def run(xx, cc, sb, **kw):
        o = dit_block(xx, cc, params, num_heads, single_buffer_weights=sb, **kw)
        jax.block_until_ready(o)
        return o

    # Case 1: single query tile / single KV chunk.  If this JAX build rejects
    # single-buffered (Buffered(1)) BlockSpecs, fall back to default buffering.
    single_buf = True
    try:
        out = run(x, c, True)
    except Exception:
        single_buf = False
        out = run(x, c, False)
    ref = dit_block_ref(x, c, params, num_heads)
    assert out.shape == (B, N, H)
    assert jnp.allclose(out, ref, atol=2e-2, rtol=2e-2), "kernel/reference mismatch"

    # Case 2: multiple query tiles AND multiple KV chunks -> exercises the
    # flash-style online-softmax loop and the tiled K/V projection pass.
    N2 = 16
    x2 = jax.random.normal(keys[12], (B, N2, H), jnp.float32)
    out2 = run(x2, c, single_buf, tile_n=8, kv_chunk=8)
    ref2 = dit_block_ref(x2, c, params, num_heads)
    assert out2.shape == (B, N2, H)
    assert jnp.allclose(out2, ref2, atol=2e-2, rtol=2e-2), "tiled kernel mismatch"

    print("KERNEL_OK")
</pallas_src>

<mosaic_0001>
module attributes {stable_mosaic.version = 11 : i64} {
  func.func @kv_proj_kernel(%arg0: i32, %arg1: i32, %arg2: memref<1x8x32xf32, #tpu.memory_space<vmem>>, %arg3: memref<1x1x192xf32, #tpu.memory_space<vmem>>, %arg4: memref<32x64xbf16, #tpu.memory_space<vmem>>, %arg5: memref<1x64xf32, #tpu.memory_space<vmem>>, %arg6: memref<1x4x8x8xbf16, #tpu.memory_space<vmem>>, %arg7: memref<1x4x8x8xbf16, #tpu.memory_space<vmem>>) attributes {dimension_semantics = [#tpu.dimension_semantics<parallel>, #tpu.dimension_semantics<parallel>], iteration_bounds = array<i64: 2, 1>, scalar_prefetch = 0 : i64, scratch_operands = 0 : i64, tpu.core_type = #tpu.core_type<tc>, window_params = [{transform_indices = @transform_0, window_bounds = array<i64: 1, 8, 32>}, {transform_indices = @transform_1, window_bounds = array<i64: 1, 1, 192>}, {pipeline_mode = #tpu.pipeline_mode<synchronous>, transform_indices = @transform_2, window_bounds = array<i64: 32, 64>}, {pipeline_mode = #tpu.pipeline_mode<synchronous>, transform_indices = @transform_3, window_bounds = array<i64: 1, 64>}, {transform_indices = @transform_4, window_bounds = array<i64: 1, 4, 8, 8>}, {transform_indices = @transform_5, window_bounds = array<i64: 1, 4, 8, 8>}]} {
    %c0 = arith.constant 0 : index
    %c0_0 = arith.constant 0 : index
    %c0_1 = arith.constant 0 : index
    %0 = vector.load %arg3[%c0, %c0_0, %c0_1] : memref<1x1x192xf32, #tpu.memory_space<vmem>>, vector<1x1x192xf32>
    %1 = vector.shape_cast %0 : vector<1x1x192xf32> to vector<1x192xf32>
    %2 = vector.extract_strided_slice %1 {offsets = [0, 0], sizes = [1, 32], strides = [1, 1]} : vector<1x192xf32> to vector<1x32xf32>
    %3 = vector.extract_strided_slice %1 {offsets = [0, 32], sizes = [1, 32], strides = [1, 1]} : vector<1x192xf32> to vector<1x32xf32>
    %c0_2 = arith.constant 0 : index
    %c0_3 = arith.constant 0 : index
    %c0_4 = arith.constant 0 : index
    %4 = vector.load %arg2[%c0_2, %c0_3, %c0_4] : memref<1x8x32xf32, #tpu.memory_space<vmem>>, vector<1x8x32xf32>
    %5 = vector.shape_cast %4 : vector<1x8x32xf32> to vector<8x32xf32>
    %cst = arith.constant dense<0.000000e+00> : vector<8xf32>
    %6 = vector.multi_reduction <add>, %5, %cst [1] : vector<8x32xf32> to vector<8xf32>
    %7 = vector.shape_cast %6 : vector<8xf32> to vector<8x1xf32>
    %cst_5 = arith.constant 3.200000e+01 : f32
    %8 = vector.broadcast %cst_5 : f32 to vector<8x1xf32>
    %9 = arith.divf %7, %8 : vector<8x1xf32>
    %10 = vector.broadcast %9 : vector<8x1xf32> to vector<8x32xf32>
    %11 = arith.subf %5, %10 : vector<8x32xf32>
    %12 = arith.mulf %11, %11 : vector<8x32xf32>
    %cst_6 = arith.constant dense<0.000000e+00> : vector<8xf32>
    %13 = vector.multi_reduction <add>, %12, %cst_6 [1] : vector<8x32xf32> to vector<8xf32>
    %14 = vector.shape_cast %13 : vector<8xf32> to vector<8x1xf32>
    %cst_7 = arith.constant 3.200000e+01 : f32
    %15 = vector.broadcast %cst_7 : f32 to vector<8x1xf32>
    %16 = arith.divf %14, %15 : vector<8x1xf32>
    %cst_8 = arith.constant 9.99999997E-7 : f32
    %17 = vector.broadcast %cst_8 : f32 to vector<8x1xf32>
    %18 = arith.addf %16, %17 : vector<8x1xf32>
    %19 = math.rsqrt %18 : vector<8x1xf32>
    %20 = vector.broadcast %9 : vector<8x1xf32> to vector<8x32xf32>
    %21 = arith.subf %5, %20 : vector<8x32xf32>
    %cst_9 = arith.constant 1.000000e+00 : f32
    %22 = vector.broadcast %cst_9 : f32 to vector<1x32xf32>
    %23 = arith.addf %22, %3 : vector<1x32xf32>
    %24 = vector.broadcast %19 : vector<8x1xf32> to vector<8x32xf32>
    %25 = vector.broadcast %23 : vector<1x32xf32> to vector<8x32xf32>
    %26 = arith.mulf %24, %25 : vector<8x32xf32>
    %27 = arith.mulf %21, %26 : vector<8x32xf32>
    %28 = vector.broadcast %2 : vector<1x32xf32> to vector<8x32xf32>
    %29 = arith.addf %27, %28 : vector<8x32xf32>
    %30 = arith.truncf %29 : vector<8x32xf32> to vector<8x32xbf16>
    %c0_10 = arith.constant 0 : index
    %c0_11 = arith.constant 0 : index
    %31 = vector.load %arg4[%c0_10, %c0_11] : memref<32x64xbf16, #tpu.memory_space<vmem>>, vector<32x64xbf16>
    %cst_12 = arith.constant dense<0.000000e+00> : vector<8x64xf32>
    %32 = tpu.matmul %30, %31, %cst_12 {dimension_numbers = #tpu.dot_dimension_numbers<[1], [0], [0], [1], [0, 0, 1, 1], [], []>} : vector<8x32xbf16>, vector<32x64xbf16>, vector<8x64xf32> -> vector<8x64xf32>
    %c0_13 = arith.constant 0 : index
    %c0_14 = arith.constant 0 : index
    %33 = vector.load %arg5[%c0_13, %c0_14] : memref<1x64xf32, #tpu.memory_space<vmem>>, vector<1x64xf32>
    %34 = vector.broadcast %33 : vector<1x64xf32> to vector<8x64xf32>
    %35 = arith.addf %32, %34 : vector<8x64xf32>
    %36 = vector.extract_strided_slice %35 {offsets = [0, 0], sizes = [8, 32], strides = [1, 1]} : vector<8x64xf32> to vector<8x32xf32>
    %37 = vector.shape_cast %36 : vector<8x32xf32> to vector<8x4x8xf32>
    %38 = vector.extract_strided_slice %35 {offsets = [0, 32], sizes = [8, 32], strides = [1, 1]} : vector<8x64xf32> to vector<8x32xf32>
    %39 = vector.shape_cast %38 : vector<8x32xf32> to vector<8x4x8xf32>
    %40 = tpu.transpose %37, [1, 2, 0] : vector<8x4x8xf32> -> vector<4x8x8xf32>
    %41 = arith.truncf %40 : vector<4x8x8xf32> to vector<4x8x8xbf16>
    %c0_15 = arith.constant 0 : index
    %c0_16 = arith.constant 0 : index
    %c0_17 = arith.constant 0 : index
    %c0_18 = arith.constant 0 : index
    %42 = vector.load %arg6[%c0_15, %c0_16, %c0_17, %c0_18] : memref<1x4x8x8xbf16, #tpu.memory_space<vmem>>, vector<1x4x8x8xbf16>
    %43 = vector.shape_cast %42 : vector<1x4x8x8xbf16> to vector<4x8x8xbf16>
    %44 = vector.shape_cast %41 : vector<4x8x8xbf16> to vector<1x4x8x8xbf16>
    tpu.vector_store %arg6[%c0_15, %c0_16, %c0_17, %c0_18], %44 {strides = array<i32>} : memref<1x4x8x8xbf16, #tpu.memory_space<vmem>>, vector<1x4x8x8xbf16>,
    %45 = tpu.transpose %39, [1, 0, 2] : vector<8x4x8xf32> -> vector<4x8x8xf32>
    %46 = arith.truncf %45 : vector<4x8x8xf32> to vector<4x8x8xbf16>
    %c0_19 = arith.constant 0 : index
    %c0_20 = arith.constant 0 : index
    %c0_21 = arith.constant 0 : index
    %c0_22 = arith.constant 0 : index
    %47 = vector.load %arg7[%c0_19, %c0_20, %c0_21, %c0_22] : memref<1x4x8x8xbf16, #tpu.memory_space<vmem>>, vector<1x4x8x8xbf16>
    %48 = vector.shape_cast %47 : vector<1x4x8x8xbf16> to vector<4x8x8xbf16>
    %49 = vector.shape_cast %46 : vector<4x8x8xbf16> to vector<1x4x8x8xbf16>
    tpu.vector_store %arg7[%c0_19, %c0_20, %c0_21, %c0_22], %49 {strides = array<i32>} : memref<1x4x8x8xbf16, #tpu.memory_space<vmem>>, vector<1x4x8x8xbf16>,
    return
  }
  func.func @transform_0(%arg0: i32, %arg1: i32) -> (i32, i32, i32) {
    %c0_i32 = arith.constant 0 : i32
    %c0_i32_0 = arith.constant 0 : i32
    return %arg0, %arg1, %c0_i32 : i32, i32, i32
  }
  func.func @transform_1(%arg0: i32, %arg1: i32) -> (i32, i32, i32) {
    %c0_i32 = arith.constant 0 : i32
    %c0_i32_0 = arith.constant 0 : i32
    %c0_i32_1 = arith.constant 0 : i32
    return %arg0, %c0_i32, %c0_i32_0 : i32, i32, i32
  }
  func.func @transform_2(%arg0: i32, %arg1: i32) -> (i32, i32) {
    %c0_i32 = arith.constant 0 : i32
    %c0_i32_0 = arith.constant 0 : i32
    %c0_i32_1 = arith.constant 0 : i32
    return %c0_i32, %c0_i32_0 : i32, i32
  }
  func.func @transform_3(%arg0: i32, %arg1: i32) -> (i32, i32) {
    %c0_i32 = arith.constant 0 : i32
    %c0_i32_0 = arith.constant 0 : i32
    %c0_i32_1 = arith.constant 0 : i32
    return %c0_i32, %c0_i32_0 : i32, i32
  }
  func.func @transform_4(%arg0: i32, %arg1: i32) -> (i32, i32, i32, i32) {
    %c0_i32 = arith.constant 0 : i32
    %c0_i32_0 = arith.constant 0 : i32
    %c0_i32_1 = arith.constant 0 : i32
    return %arg0, %arg1, %c0_i32, %c0_i32_0 : i32, i32, i32, i32
  }
  func.func @transform_5(%arg0: i32, %arg1: i32) -> (i32, i32, i32, i32) {
    %c0_i32 = arith.constant 0 : i32
    %c0_i32_0 = arith.constant 0 : i32
    %c0_i32_1 = arith.constant 0 : i32
    return %arg0, %arg1, %c0_i32, %c0_i32_0 : i32, i32, i32, i32
  }
}

module attributes {stable_mosaic.version = 11 : i64} {
  func.func @kv_proj_kernel(%arg0: i32, %arg1: i32, %arg2: memref<1x8x32xf32, #tpu.memory_space<vmem>>, %arg3: memref<1x1x192xf32, #tpu.memory_space<vmem>>, %arg4: memref<32x64xbf16, #tpu.memory_space<vmem>>, %arg5: memref<1x64xf32, #tpu.memory_space<vmem>>, %arg6: memref<1x4x8x8xbf16, #tpu.memory_space<vmem>>, %arg7: memref<1x4x8x8xbf16, #tpu.memory_space<vmem>>) attributes {dimension_semantics = [#tpu.dimension_semantics<parallel>, #tpu.dimension_semantics<parallel>], iteration_bounds = array<i64: 2, 1>, scalar_prefetch = 0 : i64, scratch_operands = 0 : i64, tpu.core_type = #tpu.core_type<tc>, window_params = [{transform_indices = @transform_0, window_bounds = array<i64: 1, 8, 32>}, {transform_indices = @transform_1, window_bounds = array<i64: 1, 1, 192>}, {pipeline_mode = #tpu.pipeline_mode<synchronous>, transform_indices = @transform_2, window_bounds = array<i64: 32, 64>}, {pipeline_mode = #tpu.pipeline_mode<synchronous>, transform_indices = @transform_3, window_bounds = array<i64: 1, 64>}, {transform_indices = @transform_4, window_bounds = array<i64: 1, 4, 8, 8>}, {transform_indices = @transform_5, window_bounds = array<i64: 1, 4, 8, 8>}]} {
    %c0 = arith.constant 0 : index
    %c0_0 = arith.constant 0 : index
    %c0_1 = arith.constant 0 : index
    %0 = vector.load %arg3[%c0, %c0_0, %c0_1] : memref<1x1x192xf32, #tpu.memory_space<vmem>>, vector<1x1x192xf32>
    %1 = vector.shape_cast %0 : vector<1x1x192xf32> to vector<1x192xf32>
    %2 = vector.extract_strided_slice %1 {offsets = [0, 0], sizes = [1, 32], strides = [1, 1]} : vector<1x192xf32> to vector<1x32xf32>
    %3 = vector.extract_strided_slice %1 {offsets = [0, 32], sizes = [1, 32], strides = [1, 1]} : vector<1x192xf32> to vector<1x32xf32>
    %c0_2 = arith.constant 0 : index
    %c0_3 = arith.constant 0 : index
    %c0_4 = arith.constant 0 : index
    %4 = vector.load %arg2[%c0_2, %c0_3, %c0_4] : memref<1x8x32xf32, #tpu.memory_space<vmem>>, vector<1x8x32xf32>
    %5 = vector.shape_cast %4 : vector<1x8x32xf32> to vector<8x32xf32>
    %cst = arith.constant dense<0.000000e+00> : vector<8xf32>
    %6 = vector.multi_reduction <add>, %5, %cst [1] : vector<8x32xf32> to vector<8xf32>
    %7 = vector.shape_cast %6 : vector<8xf32> to vector<8x1xf32>
    %cst_5 = arith.constant 3.200000e+01 : f32
    %8 = vector.broadcast %cst_5 : f32 to vector<8x1xf32>
    %9 = arith.divf %7, %8 : vector<8x1xf32>
    %10 = vector.broadcast %9 : vector<8x1xf32> to vector<8x32xf32>
    %11 = arith.subf %5, %10 : vector<8x32xf32>
    %12 = arith.mulf %11, %11 : vector<8x32xf32>
    %cst_6 = arith.constant dense<0.000000e+00> : vector<8xf32>
    %13 = vector.multi_reduction <add>, %12, %cst_6 [1] : vector<8x32xf32> to vector<8xf32>
    %14 = vector.shape_cast %13 : vector<8xf32> to vector<8x1xf32>
    %cst_7 = arith.constant 3.200000e+01 : f32
    %15 = vector.broadcast %cst_7 : f32 to vector<8x1xf32>
    %16 = arith.divf %14, %15 : vector<8x1xf32>
    %cst_8 = arith.constant 9.99999997E-7 : f32
    %17 = vector.broadcast %cst_8 : f32 to vector<8x1xf32>
    %18 = arith.addf %16, %17 : vector<8x1xf32>
    %19 = math.rsqrt %18 : vector<8x1xf32>
    %20 = vector.broadcast %9 : vector<8x1xf32> to vector<8x32xf32>
    %21 = arith.subf %5, %20 : vector<8x32xf32>
    %cst_9 = arith.constant 1.000000e+00 : f32
    %22 = vector.broadcast %cst_9 : f32 to vector<1x32xf32>
    %23 = arith.addf %22, %3 : vector<1x32xf32>
    %24 = vector.broadcast %19 : vector<8x1xf32> to vector<8x32xf32>
    %25 = vector.broadcast %23 : vector<1x32xf32> to vector<8x32xf32>
    %26 = arith.mulf %24, %25 : vector<8x32xf32>
    %27 = arith.mulf %21, %26 : vector<8x32xf32>
    %28 = vector.broadcast %2 : vector<1x32xf32> to vector<8x32xf32>
    %29 = arith.addf %27, %28 : vector<8x32xf32>
    %30 = arith.truncf %29 : vector<8x32xf32> to vector<8x32xbf16>
    %c0_10 = arith.constant 0 : index
    %c0_11 = arith.constant 0 : index
    %31 = vector.load %arg4[%c0_10, %c0_11] : memref<32x64xbf16, #tpu.memory_space<vmem>>, vector<32x64xbf16>
    %cst_12 = arith.constant dense<0.000000e+00> : vector<8x64xf32>
    %32 = tpu.matmul %30, %31, %cst_12 {dimension_numbers = #tpu.dot_dimension_numbers<[1], [0], [0], [1], [0, 0, 1, 1], [], []>} : vector<8x32xbf16>, vector<32x64xbf16>, vector<8x64xf32> -> vector<8x64xf32>
    %c0_13 = arith.constant 0 : index
    %c0_14 = arith.constant 0 : index
    %33 = vector.load %arg5[%c0_13, %c0_14] : memref<1x64xf32, #tpu.memory_space<vmem>>, vector<1x64xf32>
    %34 = vector.broadcast %33 : vector<1x64xf32> to vector<8x64xf32>
    %35 = arith.addf %32, %34 : vector<8x64xf32>
    %36 = vector.extract_strided_slice %35 {offsets = [0, 0], sizes = [8, 32], strides = [1, 1]} : vector<8x64xf32> to vector<8x32xf32>
    %37 = vector.shape_cast %36 : vector<8x32xf32> to vector<8x4x8xf32>
    %38 = vector.extract_strided_slice %35 {offsets = [0, 32], sizes = [8, 32], strides = [1, 1]} : vector<8x64xf32> to vector<8x32xf32>
    %39 = vector.shape_cast %38 : vector<8x32xf32> to vector<8x4x8xf32>
    %40 = tpu.transpose %37, [1, 2, 0] : vector<8x4x8xf32> -> vector<4x8x8xf32>
    %41 = arith.truncf %40 : vector<4x8x8xf32> to vector<4x8x8xbf16>
    %c0_15 = arith.constant 0 : index
    %c0_16 = arith.constant 0 : index
    %c0_17 = arith.constant 0 : index
    %c0_18 = arith.constant 0 : index
    %42 = vector.load %arg6[%c0_15, %c0_16, %c0_17, %c0_18] : memref<1x4x8x8xbf16, #tpu.memory_space<vmem>>, vector<1x4x8x8xbf16>
    %43 = vector.shape_cast %42 : vector<1x4x8x8xbf16> to vector<4x8x8xbf16>
    %44 = vector.shape_cast %41 : vector<4x8x8xbf16> to vector<1x4x8x8xbf16>
    tpu.vector_store %arg6[%c0_15, %c0_16, %c0_17, %c0_18], %44 {strides = array<i32>} : memref<1x4x8x8xbf16, #tpu.memory_space<vmem>>, vector<1x4x8x8xbf16>,
    %45 = tpu.transpose %39, [1, 0, 2] : vector<8x4x8xf32> -> vector<4x8x8xf32>
    %46 = arith.truncf %45 : vector<4x8x8xf32> to vector<4x8x8xbf16>
    %c0_19 = arith.constant 0 : index
    %c0_20 = arith.constant 0 : index
    %c0_21 = arith.constant 0 : index
    %c0_22 = arith.constant 0 : index
    %47 = vector.load %arg7[%c0_19, %c0_20, %c0_21, %c0_22] : memref<1x4x8x8xbf16, #tpu.memory_space<vmem>>, vector<1x4x8x8xbf16>
    %48 = vector.shape_cast %47 : vector<1x4x8x8xbf16> to vector<4x8x8xbf16>
    %49 = vector.shape_cast %46 : vector<4x8x8xbf16> to vector<1x4x8x8xbf16>
    tpu.vector_store %arg7[%c0_19, %c0_20, %c0_21, %c0_22], %49 {strides = array<i32>} : memref<1x4x8x8xbf16, #tpu.memory_space<vmem>>, vector<1x4x8x8xbf16>,
    return
  }
  func.func @transform_0(%arg0: i32, %arg1: i32) -> (i32, i32, i32) {
    %c0_i32 = arith.constant 0 : i32
    %c0_i32_0 = arith.constant 0 : i32
    return %arg0, %arg1, %c0_i32 : i32, i32, i32
  }
  func.func @transform_1(%arg0: i32, %arg1: i32) -> (i32, i32, i32) {
    %c0_i32 = arith.constant 0 : i32
    %c0_i32_0 = arith.constant 0 : i32
    %c0_i32_1 = arith.constant 0 : i32
    return %arg0, %c0_i32, %c0_i32_0 : i32, i32, i32
  }
  func.func @transform_2(%arg0: i32, %arg1: i32) -> (i32, i32) {
    %c0_i32 = arith.constant 0 : i32
    %c0_i32_0 = arith.constant 0 : i32
    %c0_i32_1 = arith.constant 0 : i32
    return %c0_i32, %c0_i32_0 : i32, i32
  }
  func.func @transform_3(%arg0: i32, %arg1: i32) -> (i32, i32) {
    %c0_i32 = arith.constant 0 : i32
    %c0_i32_0 = arith.constant 0 : i32
    %c0_i32_1 = arith.constant 0 : i32
    return %c0_i32, %c0_i32_0 : i32, i32
  }
  func.func @transform_4(%arg0: i32, %arg1: i32) -> (i32, i32, i32, i32) {
    %c0_i32 = arith.constant 0 : i32
    %c0_i32_0 = arith.constant 0 : i32
    %c0_i32_1 = arith.constant 0 : i32
    return %arg0, %arg1, %c0_i32, %c0_i32_0 : i32, i32, i32, i32
  }
  func.func @transform_5(%arg0: i32, %arg1: i32) -> (i32, i32, i32, i32) {
    %c0_i32 = arith.constant 0 : i32
    %c0_i32_0 = arith.constant 0 : i32
    %c0_i32_1 = arith.constant 0 : i32
    return %arg0, %arg1, %c0_i32, %c0_i32_0 : i32, i32, i32, i32
  }
}

</mosaic_0001>

<bundles_post_ra>
// kernel: tpu_custom_call.1
= control target key start
LH: loop header
LB: loop body
LE: loop exit
PB: predicated region body
PF: predicated region fallthrough
CT: control target
= control target key end

     0   :  { %s2296_s0 = inlined_call_operand.hbm [shape: f32[2,8,32], index: 0, kind: input, shape index: {}]   ;;  %s2297_s1 = inlined_call_operand.hbm [shape: f32[2,1,192], index: 1, kind: input, shape index: {}]   ;;  %s2298_s2 = inlined_call_operand.hbm [shape: bf16[32,64], index: 2, kind: input, shape index: {}]   ;;  %s2299_s3 = inlined_call_operand.vmem [shape: f32[1,64], index: 3, kind: input, shape index: {}]   ;;  %s2300_s4 = inlined_call_operand.hbm [shape: bf16[2,4,8,8], index: 4, kind: output, shape index: {0}]   ;;  %s2301_s5 = inlined_call_operand.hbm [shape: bf16[2,4,8,8], index: 5, kind: output, shape index: {1}]  }
   0x1   :  { %2304 = sst [smem:[#allocation19_spill]] %s2296_s0 }
   0x2   :  { %2305 = sst [smem:[#allocation20_spill]] %s2298_s2 }
   0x3   :  { %11 = vsyncpa [#allocation3], 0 }
   0x4   :  { %13 = vsyncpa [#allocation3 + $0x1], 0 }
   0x5   :  { %14 = vsyncpa [#allocation6], 0 }
   0x6   :  { %16 = vsyncpa [#allocation6 + $0x1], 0 }
   0x7   :  { %17 = vsyncpa [#allocation4], 0 }
   0x8   :  { %19 = vsyncpa [#allocation4 + $0x1], 0 }
   0x9   :  { %20 = vsyncpa [#allocation10], 0 }
   0xa   :  { %22 = vsyncpa [#allocation10 + $0x1], 0  ;;  %s1970_s18 = smov 0   ;;  %s1972_s19 = smov 0  }
   0xb   :  { %s1974_s20 = smov 0   ;;  %s1976_s21 = smov 0  }
   0xc   :  { %s1978_s22 = smov 0   ;;  %s1980_s23 = smov 0  }
   0xd LB: > { %2306 = sst [smem:[#allocation16_spill]] %s1909_s20  ;;  %s2001_s24 = sadd.s32 4294967295, %s1921_s23   ;;  %s1921_s23 = sphi %s1980_s23, %s28_s23   ;;  %s1917_s22 = sphi %s1978_s22, %s2326_s22   ;;  %s1913_s21 = sphi %s1976_s21, %s2325_s21   ;;  %s1909_s20 = sphi %s1974_s20, %s2321_s20   ;;  %s1905_s19 = sphi %s1972_s19, %s2324_s19   ;;  %s1901_s18 = sphi %s1970_s18, %s2323_s18  }
   0xe   : > { %s1579_s25 = sadd.s32 4294967294, %s1921_s23   ;;  %p62_p0 = scmp.ne.s32.totalorder %s1905_s19, %s1901_s18 }
   0xf   : > { %p63_p1 = scmp.eq.s32.totalorder %s2001_s24, 0  ;;  %p162_p3 = scmp.eq.s32.totalorder %s1579_s25, 1 }
  0x10   : > { %p1580_p5 = scmp.ge.s32.totalorder %s1921_s23, 1  ;;  %p197_p7 = scmp.lt.s32.totalorder %s1921_s23, 3 }
  0x11   : > { %p2010_p4 = por %p63_p1, %p62_p0  ;;  %p2015_p6 = por %p162_p3, %p62_p0 }
  0x12   : > { %p2020_p8 = pnand %p1580_p5, %p197_p7  ;;  %s1923_s29 = smov [#allocation7]  }
  0x13   : > { %s2308_s27 = scalar_select %p2015_p6, 1, 0 }
  0x14   : > { %s209_s30 = sshll.u32 %s1923_s29, 4  ;;  %p1634_p9 = pneg %p2020_p8  ;;  %s210_s30 = int_to_ptr.vmem [resolvable:$true] %s209_s30 }
  0x15   : > { %p1582_p10 = scmp.ge.s32.totalorder %s1921_s23, 2  ;;  %s40_s7 = sadd.s32 1, %s1917_s22 }
  0x16   : > { %p2029_p11 = pnand %p1634_p9, %p63_p1  ;;  %s1732_s8 = scalar_lea.vmem %s210_s30, 256 }
  0x17   : > { %p1733_p13 = scmp.ne.s32.totalorder %s210_s30, %s1732_s8  ;;  %p1740_p5 = scmp.lt.s32.totalorder %s210_s30, %s210_s30 }
  0x18   : > { %p1723_p12 = pneg %p2029_p11  ;;  %p1741_p7 = scmp.lt.s32.totalorder %s1732_s8, %s1732_s8 }
  0x1a   : > { %p1735_p0 = pnand %p1733_p13, %p1723_p12  ;;  %p1742_p2 = por %p1741_p7, %p1740_p5 }
  0x1c   : > { %p1736_p3 = pneg %p1735_p0 }
  0x1e   : > { %p1743_p6 = pnand %p1742_p2, %p1736_p3 }
  0x20   : > { %1746 = shalt.err (!%p1743_p6)
}
  0x21   : > { %s1924_s9 = smov 64   ;;  %s1925_s10 = smov 4  }
  0x22   : > { %s2311_s2 = sld [smem:[#allocation20_spill]]  ;;  %p42_p2 = scmp.ge.s32.totalorder %s40_s7, 2 }
  0x23   : > { %s49_s13 = sadd.s32 1, %s1909_s20  ;;  %p56_p6 = scmp.ne.s32.totalorder %s1909_s20, %s1905_s19 }
  0x24   : > { %p57_p9 = scmp.eq.s32.totalorder %s1921_s23, 0  ;;  %s2328_s7 = smov (%p42_p2, %s40_s7), 0 }
  0x25   : > { %2312 = sst [smem:[#allocation17_spill]] %s2328_s7  ;;  %p2314_p13 = scmp.eq.s32.totalorder %s2001_s24, 1 }
  0x26   : > { %p2047_p12 = por %p57_p9, %p56_p6  ;;  %s44_s16 = ssub.s32 %s1917_s22, %s2328_s7 }
  0x27   : > { %p2053_p0 = por %p2314_p13, %p56_p6  ;;  %p47_p3 = scmp.eq.s32.totalorder %s44_s16, 0 }
  0x28   : > { %1637 = dma.hbm_to_vmem [thread:$0]  (!%p2029_p11), %s2311_s2, 256, %s210_s30, [#allocation6], %s1924_s9, %s1924_s9, %s1925_s10  }
  0x29   : > { %p1653_p11 = scmp.lt.s32.totalorder %s1921_s23, 2  ;;  %s2061_s17 = sand.u32 1, %s1909_s20  }
  0x2a   : > { %s1583_s25 = sshll.u32 %s2061_s17, 3  ;;  %s1584_s30 = sshll.u32 %s1917_s22, 7 }
  0x2b   : > { %s2065_s29 = scalar_select %p47_p3, %s1909_s20, %s49_s13  }
  0x2c   : > { %s2317_s0 = sld [smem:[#allocation19_spill]]  ;;  %s230_s10 = scalar_lea.vmem [#allocation2], %s1583_s25 }
  0x2d   : > { %2316 = sst [smem:[#allocation18_spill]] %s2065_s29  ;;  %s238_s11 = sshll.u32 %s230_s10, 4  ;;  %s239_s11 = int_to_ptr.vmem [resolvable:$true] %s238_s11 }
  0x2e   : > { %p2073_p5 = pnand %p1653_p11, %p2047_p12  ;;  %s245_s16 = sand.u32 1, %s1921_s23  }
  0x2f   : > { %s1585_s2 = sshll.u32 %s2061_s17, 1  ;;  %s227_s7 = scalar_lea.sflag [#allocation3], %s2061_s17 }
  0x30   : > { %p1749_p7 = pneg %p2073_p5  ;;  %s1760_s13 = scalar_lea.vmem %s239_s11, 128 }
  0x31   : > { %p1761_p2 = scmp.ne.s32.totalorder %s239_s11, %s1760_s13  ;;  %s1926_s25 = smov [#allocation2]  }
  0x32   : > { %s236_s9 = scalar_lea.hbm %s2317_s0, %s1584_s30  ;;  %s1765_s30 = sshll.u32 %s1926_s25, 4  ;;  %s1766_s30 = int_to_ptr.vmem [resolvable:$false] %s1765_s30 }
  0x33   : > { %p1763_p6 = pnand %p1761_p2, %p1749_p7  ;;  %s1767_s14 = scalar_lea.vmem %s1766_s30, 256 }
  0x34   : > { %p1768_p12 = scmp.lt.s32.totalorder %s239_s11, %s1766_s30  ;;  %p1769_p13 = scmp.lt.s32.totalorder %s1767_s14, %s1760_s13 }
  0x35   : > { %p1764_p9 = pneg %p1763_p6 }
  0x36   : > { %p1770_p11 = por %p1769_p13, %p1768_p12 }
  0x38   : > { %p1771_p3 = pnand %p1770_p11, %p1764_p9 }
  0x3a   : > { %1774 = shalt.err (!%p1771_p3)
}
  0x3b   : > { %1641 = dma.hbm_to_vmem [thread:$0]  (!%p2073_p5), %s236_s9, 128, %s239_s11, %s227_s7  }
  0x3c   : > { %s1608_s17 = sshll.u32 %s1917_s22, 5  ;;  %s249_s0 = scalar_lea.vmem [#allocation5], %s1585_s2 }
  0x3d   : > { %s255_s10 = scalar_lea.hbm %s2297_s1, %s1608_s17  ;;  %s257_s29 = sshll.u32 %s249_s0, 4  ;;  %s258_s29 = int_to_ptr.vmem [resolvable:$true] %s257_s29 }
  0x3e   : > { %s246_s25 = scalar_lea.sflag [#allocation6], %s245_s16  ;;  %s1788_s20 = scalar_lea.vmem %s258_s29, 32 }
  0x3f   : > { %p1789_p2 = scmp.ne.s32.totalorder %s258_s29, %s1788_s20  ;;  %s1927_s13 = smov [#allocation5]  }
  0x40   : > { %s1793_s30 = sshll.u32 %s1927_s13, 4  ;;  %s1794_s30 = int_to_ptr.vmem [resolvable:$false] %s1793_s30 }
  0x41   : > { %p1791_p6 = pnand %p1789_p2, %p1749_p7  ;;  %s1795_s14 = scalar_lea.vmem %s1794_s30, 64 }
  0x42   : > { %p1796_p12 = scmp.lt.s32.totalorder %s258_s29, %s1794_s30  ;;  %p1797_p13 = scmp.lt.s32.totalorder %s1795_s14, %s1788_s20 }
  0x43   : > { %p1792_p9 = pneg %p1791_p6 }
  0x44   : > { %p1798_p11 = por %p1797_p13, %p1796_p12 }
  0x46   : > { %p1799_p3 = pnand %p1798_p11, %p1792_p9 }
  0x48   : > { %1802 = shalt.err (!%p1799_p3)
}
  0x49   : > { %1644 = dma.hbm_to_vmem [thread:$0]  (!%p2073_p5), %s255_s10, 32, %s258_s29, %s246_s25  }
  0x4a   : > { %266 = sbr.rel (%p2020_p8) target bundleno = 1184 (0x4a0), region = 36  ;;  %s2099_s0 = sand.u32 (!%p2020_p8), 1, %s1905_s19  }
  0x4b   : > { %s1589_s2 = sshll.u32 (!%p2020_p8), %s2099_s0, 3  ;;  %s269_s7 = scalar_lea.sflag (!%p2020_p8), [#allocation3], %s2099_s0 }
  0x4c   : > { %s272_s9 = scalar_lea.vmem (!%p2020_p8), [#allocation2], %s1589_s2 }
  0x4f   : > { %1880 = dma.done.wait (%p2010_p4), %s269_s7, 128  }
  0x50   : > { %1882 = vsyncadd (%p2010_p4), %s269_s7, 4294967168  ;;  %s277_s20 = sand.u32 1, %s2001_s24   ;;  %s1590_s28 = sshll.u32 %s2099_s0, 1 }
  0x51   : > { %s278_s29 = scalar_lea.sflag [#allocation6], %s277_s20  ;;  %s281_s11 = scalar_lea.vmem [#allocation5], %s1590_s28 }
  0x52   : > { %1884 = dma.done.wait (%p2010_p4), %s278_s29, 32  }
  0x53   : > { %1886 = vsyncadd (%p2010_p4), %s278_s29, 4294967264 }
  0x54   : > { %1888 = dma.done.wait (%p63_p1), [#allocation6], 256  }
  0x55   : > { %1890 = vsyncadd (%p63_p1), [#allocation6], 4294967040  ;;  %vm327_vm0 = vcmask 261120   ;;  %v326_v0 = vld [vmem:[%s272_s9] sm:$0xff]  ;;  %v343_v7 = vlaneseq  ;;  %v325_v10 = vld [vmem:[%s281_s11] sm:$0x3] }
  0x56   : > { %v328_v1 = vsel %vm327_vm0, %v326_v0, 0.0  ;;  %v1717_v11 = vld [vmem:[#allocation7 + $0x8] sm:$0xff]   ;;  %v1928_v13 = vmov 0.0   ;;  %v1718_v17 = vld [vmem:[#allocation7] sm:$0xff]   ;;  %v341_v18 = vadd.f32 1.0, %v325_v10  ;;  %vm1929_vm1 = vmmov 0  }
  0x57   : > { %329 = vadd.xlane.f32.xlu0 %v328_v1  ;;  %v344_v8 = vshrl.u32 %v343_v7, 7  ;;  %1614 = vmatprep.subr.bf16.mxu0 %v1928_v13  ;;  %s1930_s24 = smov 96   ;;  %v1594_v26 = vld [vmem:[%s2299_s3] ss:$0 sm:$0xff]  ;;  %s1931_s16 = smov 112   ;;  %vm1306_vm2 = vcmask 60416  }
  0x58   : > { %1615 = vmatpush3.bf16.msra.mxu0 %v1717_v11  ;;  %1618 = vmatprep.mubr.msk.bf16.mxu0 %vm1929_vm1, %v1928_v13  ;;  %s1932_s17 = smov 120   ;;  %s1933_s6 = smov 104   ;;  %v1934_v32 = vmov 1983009808   ;;  %v1935_v35 = vmov 1934713408  }
  0x59   : > { %v345_v9 = vsub.s32 0, %v344_v8  ;;  %1616 = vmatprep.subr.bf16.mxu0 %v1928_v13  ;;  %v441_v33 = vunpack.c.l.s4 %v1934_v32  ;;  %v473_v36 = vunpack.c.l.s4 %v1935_v35  ;;  %s1592_s8 = sshll.u32 %s2099_s0, 4  ;;  %s1609_s10 = sshll.u32 %s1913_s21, 8 }
  0x5a   : > { %s2190_s30 = scalar_lea.hbm %s2301_s5, %s1609_s10  ;;  %s321_s14 = scalar_lea.vmem [#allocation9], %s1592_s8 }
  0x5b   : > { %v358_v12 = vrot.slane %v325_v10, %v345_v9  ;;  %v346_v19 = vrot.slane %v341_v18, %v345_v9  ;;  %v442_v34 = vunpack.c.0.s8 %v441_v33  ;;  %v474_v40 = vunpack.c.0.s8 %v473_v36  ;;  %s1426_s2 = sshll.u32 %s321_s14, 4  ;;  %s1393_s7 = scalar_lea.sflag [#allocation10], %s2099_s0  ;;  %s2198_s2 = int_to_ptr.vmem [resolvable:$true] %s1426_s2 }
  0x5c   : > { %1617 = vmatpush3.bf16.msra.mxu0 %v1718_v17  ;;  %s1803_s9 = scalar_lea.vmem %s2198_s2, 256  ;;  %s1936_s20 = smov [#allocation9]  }
  0x5d   : > { %v2128_v39 = vsub.s32 %v442_v34, %v344_v8  ;;  %v2131_v46 = vsub.s32 %v474_v40, %v344_v8  ;;  %p1804_p1 = scmp.ne.s32.totalorder %s2198_s2, %s1803_s9  ;;  %s1807_s28 = sshll.u32 %s1936_s20, 4  ;;  %s1808_s28 = int_to_ptr.vmem [resolvable:$false] %s1807_s28 }
  0x5e   : > { %s1809_s29 = scalar_lea.vmem %s1808_s28, 512  ;;  %p1810_p5 = scmp.lt.s32.totalorder %s2198_s2, %s1808_s28 }
  0x5f   : > { %p1805_p4 = pnand %p1804_p1, %p2053_p0  ;;  %p1811_p7 = scmp.lt.s32.totalorder %s1809_s29, %s1803_s9 }
  0x61   : > { %p1806_p8 = pneg %p1805_p4  ;;  %p1812_p2 = por %p1811_p7, %p1810_p5 }
  0x63   : > { %p1813_p6 = pnand %p1812_p2, %p1806_p8 }
  0xe0   : > { %v330_v2 = vpop.xlane.xlu0 %329 }
  0xe1   : > { %v332_v3 = vmul.f32 0.03125, %v330_v2 }
  0xe3   : > { %v333_v4 = vsub.f32 %v326_v0, %v332_v3 }
  0xe5   : > { %v334_v5 = vmul.f32 %v333_v4, %v333_v4 }
  0xe7   : > { %v335_v6 = vsel %vm327_vm0, %v334_v5, 0.0 }
  0xe8   : > { %336 = vadd.xlane.f32.xlu0 %v335_v6 }
 0x171   : > { %v337_v14 = vpop.xlane.xlu0 %336 }
 0x172   : > { %v338_v15 = vmul.f32 0.03125, %v337_v14 }
 0x174   : > { %v339_v16 = vadd.f32 1e-06, %v338_v15 }
 0x176   : > { %1719 = vrsqrt.f32 %v339_v16 }
 0x183   : > { %v1720_v20 = vpop.eup %1719 }
 0x184   : > { %v348_v21 = vmul.f32 %v1720_v20, %v346_v19 }
 0x186   : > { %350 = vrot.lane.b32.xlu1 %v348_v21, %s1930_s24 }
 0x1f8   : > { %v351_v22 = vpop.permute.xlu1 %350 }
 0x1f9   : > { %v353_v23 = vmul.f32 %v351_v22, %v333_v4 }
 0x1fb   : > { %v360_v24 = vadd.f32 %v358_v12, %v353_v23 }
 0x1fd   : > { %v361_v25 = vpack.c.bf16 %v360_v24, %v360_v24 }
 0x1ff   : > { %1619 = vmatmul.mubr.msk.bf16.vlgmr.msra.gmra.mxu0 %vm327_vm0, %v361_v25 }
 0x2bf   : > { %v422_v27 = vpop.f32.mrf.mxu0 }
 0x2c0   : > { %v423_v28 = vadd.f32 %v1594_v26, %v422_v27 }
 0x2c1   : > { %v1620_v29 = vpop.f32.mrf.mxu0 }
 0x2c2   : > { %432 = vrot.lane.b32.xlu0 %v423_v28, %s1931_s16  ;;  %429 = vrot.lane.b32.xlu1 %v423_v28, %s1932_s17 }
 0x2c3   : > { %v425_v30 = vpop.f32.mrf.mxu0 }
 0x2c5   : > { %v1621_v31 = vpop.f32.mrf.mxu0 }
 0x2c6   : > { %435 = vrot.lane.b32.xlu1 %v423_v28, %s1933_s6 }
 0x334   : > { %v433_v37 = vpop.permute.xlu0 %432  ;;  %v430_v38 = vpop.permute.xlu1 %429 }
 0x335   : > { %508 = vrot.lane.b32.xlu1 %v430_v38, %s1930_s24  ;;  %v439_v41 = vcombine.high %v423_v28, %v433_v37  ;;  %v438_v43 = vcombine.low %v423_v28, %v433_v37 }
 0x337   : > { %v453_v48 = vrot.slane %v439_v41, %v2128_v39  ;;  %v446_v50 = vrot.slane %v438_v43, %v2128_v39 }
 0x338   : > { %v436_v42 = vpop.permute.xlu1 %435 }
 0x339   : > { %v454_v44 = vcombine.low %v430_v38, %v436_v42  ;;  %v455_v45 = vcombine.high %v430_v38, %v436_v42  ;;  %510 = vrot.lane.b32.xlu1 %v433_v37, %s1930_s24 }
 0x33b   : > { %v462_v47 = vrot.slane %v454_v44, %v2128_v39  ;;  %v469_v49 = vrot.slane %v455_v45, %v2128_v39 }
 0x33d   : > { %v486_v51 = vcombine.low %v453_v48, %v469_v49  ;;  %v487_v53 = vcombine.high %v453_v48, %v469_v49  ;;  %v470_v54 = vcombine.low %v446_v50, %v462_v47  ;;  %v471_v58 = vcombine.high %v446_v50, %v462_v47 }
 0x33f   : > { %v494_v52 = vrot.slane %v486_v51, %v2131_v46  ;;  %v501_v55 = vrot.slane %v487_v53, %v2131_v46  ;;  %v478_v56 = vrot.slane %v470_v54, %v2131_v46  ;;  %v485_v59 = vrot.slane %v471_v58, %v2131_v46 }
 0x341   : > { %714 = vxpose.xlu0.b32.start.end [1/1] (short) (narrow) %v494_v52, 8  ;;  %v502_v57 = vcombine.high %v478_v56, %v1928_v13  ;;  %v503_v60 = vcombine.high %v485_v59, %v1928_v13  ;;  %v504_v61 = vcombine.high %v494_v52, %v1928_v13  ;;  %v505_v62 = vcombine.high %v501_v55, %v1928_v13 }
 0x345   : > { %778 = vxpose.xlu0.b32.start.end [1/1] (short) (narrow) %v501_v55, 8 }
 0x349   : > { %618 = vxpose.xlu0.b32.start.end [1/1] (short) (narrow) %v502_v57, 8 }
 0x362   : > { %586 = vxpose.xlu1.b32.start.end [1/1] (short) (narrow) %v478_v56, 8 }
 0x366   : > { %650 = vxpose.xlu1.b32.start.end [1/1] (short) (narrow) %v485_v59, 8 }
 0x36a   : > { %682 = vxpose.xlu1.b32.start.end [1/1] (short) (narrow) %v503_v60, 8 }
 0x36e   : > { %746 = vxpose.xlu1.b32.start.end [1/1] (short) (narrow) %v504_v61, 8 }
 0x372   : > { %810 = vxpose.xlu1.b32.start.end [1/1] (short) (narrow) %v505_v62, 8  ;;  %506 = vrot.lane.b32.xlu0 %v423_v28, %s1930_s24 }
 0x390   : > { %512 = vrot.lane.b32.xlu1 %v436_v42, %s1930_s24 }
 0x3a7   : > { %v2147_v63 = vpop.permute.xlu1 %508 }
 0x3ab   : > { %v511_v0 = vpop.permute.xlu1 %510 }
 0x3bd   : > { %v730_v1 = vpop.trf.xlu0 }
 0x3c1   : > { %v794_v3 = vpop.trf.xlu0 }
 0x3c2   : > { %v874_v10 = vcombine.low %v730_v1, %v794_v3  ;;  %v875_v11 = vcombine.high %v730_v1, %v794_v3 }
 0x3c4   : > { %v882_v19 = vrot.slane %v874_v10, %v2128_v39  ;;  %v889_v20 = vrot.slane %v875_v11, %v2128_v39 }
 0x3c5   : > { %v634_v6 = vpop.trf.xlu0 }
 0x3de   : > { %v602_v2 = vpop.trf.xlu1 }
 0x3e2   : > { %v666_v4 = vpop.trf.xlu1 }
 0x3e3   : > { %v842_v9 = vcombine.low %v602_v2, %v666_v4  ;;  %v843_v15 = vcombine.high %v602_v2, %v666_v4 }
 0x3e4   : > { %v507_v47 = vpop.permute.xlu0 %506 }
 0x3e5   : > { %v850_v16 = vrot.slane %v842_v9, %v2128_v39  ;;  %v857_v25 = vrot.slane %v843_v15, %v2128_v39  ;;  %v518_v50 = vcombine.low %v507_v47, %v511_v0  ;;  %v519_v51 = vcombine.high %v507_v47, %v511_v0 }
 0x3e6   : > { %v698_v5 = vpop.trf.xlu1 }
 0x3e7   : > { %v858_v7 = vcombine.low %v634_v6, %v698_v5  ;;  %v859_v12 = vcombine.high %v634_v6, %v698_v5  ;;  %v526_v56 = vrot.slane %v518_v50, %v2128_v39  ;;  %v533_v57 = vrot.slane %v519_v51, %v2128_v39 }
 0x3e9   : > { %v866_v13 = vrot.slane %v858_v7, %v2128_v39  ;;  %v873_v21 = vrot.slane %v859_v12, %v2128_v39 }
 0x3ea   : > { %v762_v8 = vpop.trf.xlu1 }
 0x3eb   : > { %v906_v22 = vcombine.low %v850_v16, %v866_v13  ;;  %v907_v31 = vcombine.high %v850_v16, %v866_v13  ;;  %v922_v32 = vcombine.low %v857_v25, %v873_v21  ;;  %v923_v41 = vcombine.high %v857_v25, %v873_v21 }
 0x3ed   : > { %v914_v29 = vrot.slane %v906_v22, %v2131_v46  ;;  %v921_v38 = vrot.slane %v907_v31, %v2131_v46  ;;  %v930_v40 = vrot.slane %v922_v32, %v2131_v46  ;;  %v937_v45 = vrot.slane %v923_v41, %v2131_v46 }
 0x3ee   : > { %v826_v14 = vpop.trf.xlu1 }
 0x3ef   : > { %v890_v17 = vcombine.low %v762_v8, %v826_v14  ;;  %v891_v18 = vcombine.high %v762_v8, %v826_v14 }
 0x3f1   : > { %v898_v23 = vrot.slane %v890_v17, %v2128_v39  ;;  %v905_v24 = vrot.slane %v891_v18, %v2128_v39 }
 0x3f3   : > { %v938_v26 = vcombine.low %v882_v19, %v898_v23  ;;  %v939_v27 = vcombine.high %v882_v19, %v898_v23  ;;  %v954_v28 = vcombine.low %v889_v20, %v905_v24  ;;  %v955_v33 = vcombine.high %v889_v20, %v905_v24 }
 0x3f5   : > { %v946_v30 = vrot.slane %v938_v26, %v2131_v46  ;;  %v953_v36 = vrot.slane %v939_v27, %v2131_v46  ;;  %v962_v37 = vrot.slane %v954_v28, %v2131_v46  ;;  %v969_v44 = vrot.slane %v955_v33, %v2131_v46 }
 0x3f7   : > { %v971_v34 = vcombine.high %v914_v29, %v946_v30  ;;  %v970_v35 = vcombine.low %v914_v29, %v946_v30  ;;  %v972_v42 = vcombine.low %v921_v38, %v953_v36  ;;  %v975_v43 = vcombine.high %v930_v40, %v962_v37 }
 0x3f8   : > { %v973_v48 = vcombine.high %v921_v38, %v953_v36  ;;  %v977_v49 = vcombine.high %v937_v45, %v969_v44  ;;  %v974_v55 = vcombine.low %v930_v40, %v962_v37  ;;  %v976_v60 = vcombine.low %v937_v45, %v969_v44 }
 0x3f9   : > { %1010 = vxpose.xlu0.b32.start.end [1/1] (short) (narrow) %v971_v34, 8  ;;  %978 = vxpose.xlu1.b32.start.end [1/1] (short) (narrow) %v970_v35, 8 }
 0x3fd   : > { %1042 = vxpose.xlu0.b32.start.end [1/1] (short) (narrow) %v972_v42, 8  ;;  %1138 = vxpose.xlu1.b32.start.end [1/1] (short) (narrow) %v975_v43, 8 }
 0x401   : > { %1074 = vxpose.xlu0.b32.start.end [1/1] (short) (narrow) %v973_v48, 8  ;;  %1202 = vxpose.xlu1.b32.start.end [1/1] (short) (narrow) %v977_v49, 8 }
 0x402   : > { %v513_v52 = vpop.permute.xlu1 %512 }
 0x403   : > { %v534_v53 = vcombine.low %v2147_v63, %v513_v52  ;;  %v535_v54 = vcombine.high %v2147_v63, %v513_v52 }
 0x405   : > { %v542_v58 = vrot.slane %v534_v53, %v2128_v39  ;;  %v549_v59 = vrot.slane %v535_v54, %v2128_v39  ;;  %1106 = vxpose.xlu0.b32.start.end [1/1] (short) (narrow) %v974_v55, 8 }
 0x407   : > { %v550_v61 = vcombine.low %v526_v56, %v542_v58  ;;  %v551_v62 = vcombine.high %v526_v56, %v542_v58  ;;  %v566_v0 = vcombine.low %v533_v57, %v549_v59  ;;  %v567_v1 = vcombine.high %v533_v57, %v549_v59 }
 0x409   : > { %v558_v2 = vrot.slane %v550_v61, %v2131_v46  ;;  %v565_v3 = vrot.slane %v551_v62, %v2131_v46  ;;  %v574_v63 = vrot.slane %v566_v0, %v2131_v46  ;;  %v581_v4 = vrot.slane %v567_v1, %v2131_v46  ;;  %1170 = vxpose.xlu0.b32.start.end [1/1] (short) (narrow) %v976_v60, 8 }
 0x40b   : > { %v1311_v5 = vcombine.low %v558_v2, %v565_v3  ;;  %v1598_v6 = vcombine.high %v558_v2, %v565_v3  ;;  %v1327_v7 = vcombine.low %v574_v63, %v581_v4  ;;  %v1599_v8 = vcombine.high %v574_v63, %v581_v4 }
 0x40d   : > { %v1318_v9 = vrot.slane %v1311_v5, %v2128_v39  ;;  %v1326_v10 = vrot.slane %v1598_v6, %v2128_v39  ;;  %v1334_v11 = vrot.slane %v1327_v7, %v2128_v39  ;;  %v1342_v12 = vrot.slane %v1599_v8, %v2128_v39 }
 0x40f   : > { %v1343_v13 = vcombine.low %v1318_v9, %v1326_v10  ;;  %v1344_v14 = vcombine.high %v1318_v9, %v1326_v10  ;;  %v1359_v15 = vcombine.low %v1334_v11, %v1342_v12  ;;  %v1360_v16 = vcombine.high %v1334_v11, %v1342_v12 }
 0x411   : > { %v1351_v17 = vrot.slane %v1343_v13, %v2131_v46  ;;  %v1358_v18 = vrot.slane %v1344_v14, %v2131_v46  ;;  %v1367_v19 = vrot.slane %v1359_v15, %v2131_v46  ;;  %v1374_v20 = vrot.slane %v1360_v16, %v2131_v46 }
 0x413   : > { %v1375_v21 = vcombine.low %v1351_v17, %v1367_v19  ;;  %v1376_v22 = vcombine.high %v1351_v17, %v1367_v19  ;;  %v1377_v23 = vcombine.low %v1358_v18, %v1374_v20  ;;  %v1378_v24 = vcombine.high %v1358_v18, %v1374_v20 }
 0x415   : > { %v1379_v25 = vpack.c.bf16 %v1375_v21, %v1375_v21  ;;  %v1380_v26 = vpack.c.bf16 %v1376_v22, %v1376_v22  ;;  %v1381_v27 = vpack.c.bf16 %v1377_v23, %v1377_v23  ;;  %v1382_v28 = vpack.c.bf16 %v1378_v24, %v1378_v24 }
 0x417   : > { %1383 = vst.msk [vmem:[%s321_s14] sm:$0xf] %vm1306_vm2, %v1379_v25  ;;  %1384 = vst.msk [vmem:[%s321_s14 + $0x4] sm:$0xf] %vm1306_vm2, %v1380_v26 }
 0x418   : > { %1385 = vst.msk [vmem:[%s321_s14 + $0x8] sm:$0xf] %vm1306_vm2, %v1381_v27  ;;  %1386 = vst.msk [vmem:[%s321_s14 + $0xc] sm:$0xf] %vm1306_vm2, %v1382_v28 }
 0x419   : > { %1816 = shalt.err (!%p1813_p6)
}
 0x41a   : > { %s1817_s11 = scalar_lea.hbm %s2190_s30, 256  ;;  %s1821_s12 = scalar_lea.hbm %s2301_s5, 512 }
 0x41b   : > { %p1818_p9 = scmp.ne.s32.totalorder %s2190_s30, %s1817_s11  ;;  %p1822_p11 = scmp.lt.s32.totalorder %s2190_s30, %s2301_s5 }
 0x41c   : > { %p1823_p3 = scmp.lt.s32.totalorder %s1821_s12, %s1817_s11 }
 0x41d   : > { %p1819_p12 = pnand %p1818_p9, %p2053_p0 }
 0x41e   : > { %p1824_p1 = por %p1823_p3, %p1822_p11 }
 0x41f   : > { %p1820_p13 = pneg %p1819_p12 }
 0x421   : > { %p1825_p4 = pnand %p1824_p1, %p1820_p13 }
 0x423   : > { %1828 = shalt.err (!%p1825_p4)
}
 0x424   : > { %s1937_s6 = smov 64   ;;  %s1938_s25 = smov 4  }
 0x425   : > { %1631 = dma.vmem_to_hbm [thread:$0]  (%p2053_p0), %s2198_s2, 256, %s2190_s30, %s1393_s7, %s1937_s6, %s1937_s6, %s1938_s25  }
 0x426   : > { %s314_s13 = scalar_lea.vmem [#allocation8], %s1592_s8  ;;  %s2241_s7 = scalar_lea.hbm %s2300_s4, %s1609_s10 }
 0x427   : > { %s1408_s30 = sshll.u32 %s314_s13, 4  ;;  %s1388_s8 = scalar_lea.sflag [#allocation4], %s2099_s0  ;;  %s2243_s30 = int_to_ptr.vmem [resolvable:$true] %s1408_s30 }
 0x428   : > { %s1829_s21 = scalar_lea.vmem %s2243_s30, 256  ;;  %s1939_s10 = smov [#allocation8]  }
 0x429   : > { %p1830_p8 = scmp.ne.s32.totalorder %s2243_s30, %s1829_s21  ;;  %s1833_s9 = sshll.u32 %s1939_s10, 4  ;;  %s1834_s9 = int_to_ptr.vmem [resolvable:$false] %s1833_s9 }
 0x42a   : > { %s1835_s20 = scalar_lea.vmem %s1834_s9, 512  ;;  %p1836_p2 = scmp.lt.s32.totalorder %s2243_s30, %s1834_s9 }
 0x42b   : > { %p1831_p5 = pnand %p1830_p8, %p2053_p0  ;;  %p1837_p6 = scmp.lt.s32.totalorder %s1835_s20, %s1829_s21 }
 0x42d   : > { %p1832_p7 = pneg %p1831_p5  ;;  %p1838_p9 = por %p1837_p6, %p1836_p2 }
 0x42f   : > { %p1839_p12 = pnand %p1838_p9, %p1832_p7 }
 0x475   : > { %v1026_v29 = vpop.trf.xlu0  ;;  %v994_v30 = vpop.trf.xlu1 }
 0x479   : > { %v1058_v31 = vpop.trf.xlu0  ;;  %v1154_v32 = vpop.trf.xlu1 }
 0x47a   : > { %v1234_v37 = vcombine.low %v994_v30, %v1058_v31 }
 0x47c   : > { %v1241_v42 = vrot.slane %v1234_v37, %v2128_v39 }
 0x47d   : > { %v1090_v33 = vpop.trf.xlu0  ;;  %v1218_v36 = vpop.trf.xlu1 }
 0x47e   : > { %v1242_v34 = vcombine.low %v1026_v29, %v1090_v33  ;;  %v1258_v40 = vcombine.low %v1154_v32, %v1218_v36 }
 0x480   : > { %v1249_v38 = vrot.slane %v1242_v34, %v2128_v39  ;;  %v1265_v47 = vrot.slane %v1258_v40, %v2128_v39 }
 0x481   : > { %v1122_v35 = vpop.trf.xlu0 }
 0x482   : > { %v1266_v44 = vcombine.low %v1241_v42, %v1249_v38  ;;  %v1267_v45 = vcombine.high %v1241_v42, %v1249_v38 }
 0x484   : > { %v1274_v51 = vrot.slane %v1266_v44, %v2131_v46  ;;  %v1281_v52 = vrot.slane %v1267_v45, %v2131_v46 }
 0x485   : > { %v1186_v41 = vpop.trf.xlu0 }
 0x486   : > { %v1250_v43 = vcombine.low %v1122_v35, %v1186_v41 }
 0x488   : > { %v1257_v48 = vrot.slane %v1250_v43, %v2128_v39 }
 0x48a   : > { %v1282_v49 = vcombine.low %v1257_v48, %v1265_v47  ;;  %v1283_v50 = vcombine.high %v1257_v48, %v1265_v47 }
 0x48c   : > { %v1290_v53 = vrot.slane %v1282_v49, %v2131_v46  ;;  %v1297_v54 = vrot.slane %v1283_v50, %v2131_v46 }
 0x48e   : > { %v1298_v55 = vcombine.low %v1274_v51, %v1290_v53  ;;  %v1299_v56 = vcombine.high %v1274_v51, %v1290_v53  ;;  %v1300_v57 = vcombine.low %v1281_v52, %v1297_v54  ;;  %v1301_v39 = vcombine.high %v1281_v52, %v1297_v54 }
 0x490   : > { %v1302_v58 = vpack.c.bf16 %v1298_v55, %v1298_v55  ;;  %v1303_v59 = vpack.c.bf16 %v1299_v56, %v1299_v56  ;;  %v1304_v60 = vpack.c.bf16 %v1300_v57, %v1300_v57  ;;  %v1305_v61 = vpack.c.bf16 %v1301_v39, %v1301_v39 }
 0x492   : > { %1307 = vst.msk [vmem:[%s314_s13] sm:$0xf] %vm1306_vm2, %v1302_v58  ;;  %1308 = vst.msk [vmem:[%s314_s13 + $0x4] sm:$0xf] %vm1306_vm2, %v1303_v59 }
 0x493   : > { %1309 = vst.msk [vmem:[%s314_s13 + $0x8] sm:$0xf] %vm1306_vm2, %v1304_v60  ;;  %1310 = vst.msk [vmem:[%s314_s13 + $0xc] sm:$0xf] %vm1306_vm2, %v1305_v61 }
 0x494   : > { %1842 = shalt.err (!%p1839_p12)
}
 0x495   : > { %s1843_s28 = scalar_lea.hbm %s2241_s7, 256  ;;  %s1847_s11 = scalar_lea.hbm %s2300_s4, 512 }
 0x496   : > { %p1844_p13 = scmp.ne.s32.totalorder %s2241_s7, %s1843_s28  ;;  %p1848_p1 = scmp.lt.s32.totalorder %s2241_s7, %s2300_s4 }
 0x497   : > { %p1849_p4 = scmp.lt.s32.totalorder %s1847_s11, %s1843_s28 }
 0x498   : > { %p1845_p11 = pnand %p1844_p13, %p2053_p0 }
 0x499   : > { %p1850_p8 = por %p1849_p4, %p1848_p1 }
 0x49a   : > { %p1846_p3 = pneg %p1845_p11 }
 0x49c   : > { %p1851_p5 = pnand %p1850_p8, %p1846_p3 }
 0x49e   : > { %1854 = shalt.err (!%p1851_p5)
}
 0x49f   : > { %1630 = dma.vmem_to_hbm [thread:$0]  (%p2053_p0), %s2243_s30, 256, %s2241_s7, %s1388_s8, %s1937_s6, %s1937_s6, %s1938_s25  }
 0x4a0 PF: > { %s1441_s12 = sand.u32 1, %s1901_s18   ;;  %p2319_p7 = scmp.ne.s32.totalorder %s2308_s27, 0 }
 0x4a1   : > { %s1442_s16 = scalar_lea.sflag [#allocation4], %s1441_s12 }
 0x4a2   : > { %p1646_p2 = pnand %p1582_p10, %p2319_p7 }
 0x4a4   : > { %p1647_p6 = pneg %p1646_p2 }
 0x4a6   : > { %1892 = dma.done.wait (%p1647_p6), %s1442_s16, 256  }
 0x4a7   : > { %1894 = vsyncadd (%p1647_p6), %s1442_s16, 4294967040  ;;  %s1451_s17 = scalar_lea.sflag [#allocation10], %s1441_s12 }
 0x4a8   : > { %1896 = dma.done.wait (%p1647_p6), %s1451_s17, 256  }
 0x4a9   : > { %1898 = vsyncadd (%p1647_p6), %s1451_s17, 4294967040  ;;  %s28_s23 = sadd.s32 1, %s1921_s23   ;;  %s2320_s15 = sld [smem:[#allocation16_spill]] }
 0x4aa   : > { %p25_p9 = scmp.ge.s32.totalorder %s28_s23, 4   ;;  %s2321_s20 = sld [smem:[#allocation18_spill]] }
 0x4ab   : > { %s2322_s6 = sld [smem:[#allocation17_spill]]  ;;  %s2323_s18 = smov %s1905_s19 }
 0x4ac   : > { %s2325_s21 = smov %s1917_s22 }
 0x4ad   :  { %27 = sbr.rel (!%p25_p9) target bundleno = 13 (0xd), region = 115 }
 0x4af   : > { %s2324_s19 = smov %s2320_s15 }
 0x4b1   : > { %s2326_s22 = smov %s2322_s6 }
 0x4b2   :  { %1456 = vsyncpa [#allocation3], 1 }
 0x4b3   :  { %1458 = vsyncpa [#allocation3 + $0x1], 1 }
 0x4b4   :  { %1459 = vsyncpa [#allocation6], 1 }
 0x4b5   :  { %1461 = vsyncpa [#allocation6 + $0x1], 1 }
 0x4b6   :  { %1462 = vsyncpa [#allocation4], 1 }
 0x4b7   :  { %1464 = vsyncpa [#allocation4 + $0x1], 1 }
 0x4b8   :  { %1465 = vsyncpa [#allocation10], 1 }
 0x4b9   :  { %1467 = vsyncpa [#allocation10 + $0x1], 1 }

// kernel: tpu_custom_call.1
= control target key start
LH: loop header
LB: loop body
LE: loop exit
PB: predicated region body
PF: predicated region fallthrough
CT: control target
= control target key end

     0   :  { %s2296_s0 = inlined_call_operand.hbm [shape: f32[2,8,32], index: 0, kind: input, shape index: {}]   ;;  %s2297_s1 = inlined_call_operand.hbm [shape: f32[2,1,192], index: 1, kind: input, shape index: {}]   ;;  %s2298_s2 = inlined_call_operand.hbm [shape: bf16[32,64], index: 2, kind: input, shape index: {}]   ;;  %s2299_s3 = inlined_call_operand.vmem [shape: f32[1,64], index: 3, kind: input, shape index: {}]   ;;  %s2300_s4 = inlined_call_operand.hbm [shape: bf16[2,4,8,8], index: 4, kind: output, shape index: {0}]   ;;  %s2301_s5 = inlined_call_operand.hbm [shape: bf16[2,4,8,8], index: 5, kind: output, shape index: {1}]  }
   0x1   :  { %2304 = sst [smem:[#allocation19_spill]] %s2296_s0 }
   0x2   :  { %2305 = sst [smem:[#allocation20_spill]] %s2298_s2 }
   0x3   :  { %11 = vsyncpa [#allocation3], 0 }
   0x4   :  { %13 = vsyncpa [#allocation3 + $0x1], 0 }
   0x5   :  { %14 = vsyncpa [#allocation6], 0 }
   0x6   :  { %16 = vsyncpa [#allocation6 + $0x1], 0 }
   0x7   :  { %17 = vsyncpa [#allocation4], 0 }
   0x8   :  { %19 = vsyncpa [#allocation4 + $0x1], 0 }
   0x9   :  { %20 = vsyncpa [#allocation10], 0 }
   0xa   :  { %22 = vsyncpa [#allocation10 + $0x1], 0  ;;  %s1970_s18 = smov 0   ;;  %s1972_s19 = smov 0  }
   0xb   :  { %s1974_s20 = smov 0   ;;  %s1976_s21 = smov 0  }
   0xc   :  { %s1978_s22 = smov 0   ;;  %s1980_s23 = smov 0  }
   0xd LB: > { %2306 = sst [smem:[#allocation16_spill]] %s1909_s20  ;;  %s2001_s24 = sadd.s32 4294967295, %s1921_s23   ;;  %s1921_s23 = sphi %s1980_s23, %s28_s23   ;;  %s1917_s22 = sphi %s1978_s22, %s2326_s22   ;;  %s1913_s21 = sphi %s1976_s21, %s2325_s21   ;;  %s1909_s20 = sphi %s1974_s20, %s2321_s20   ;;  %s1905_s19 = sphi %s1972_s19, %s2324_s19   ;;  %s1901_s18 = sphi %s1970_s18, %s2323_s18  }
   0xe   : > { %s1579_s25 = sadd.s32 4294967294, %s1921_s23   ;;  %p62_p0 = scmp.ne.s32.totalorder %s1905_s19, %s1901_s18 }
   0xf   : > { %p63_p1 = scmp.eq.s32.totalorder %s2001_s24, 0  ;;  %p162_p3 = scmp.eq.s32.totalorder %s1579_s25, 1 }
  0x10   : > { %p1580_p5 = scmp.ge.s32.totalorder %s1921_s23, 1  ;;  %p197_p7 = scmp.lt.s32.totalorder %s1921_s23, 3 }
  0x11   : > { %p2010_p4 = por %p63_p1, %p62_p0  ;;  %p2015_p6 = por %p162_p3, %p62_p0 }
  0x12   : > { %p2020_p8 = pnand %p1580_p5, %p197_p7  ;;  %s1923_s29 = smov [#allocation7]  }
  0x13   : > { %s2308_s27 = scalar_select %p2015_p6, 1, 0 }
  0x14   : > { %s209_s30 = sshll.u32 %s1923_s29, 4  ;;  %p1634_p9 = pneg %p2020_p8  ;;  %s210_s30 = int_to_ptr.vmem [resolvable:$true] %s209_s30 }
  0x15   : > { %p1582_p10 = scmp.ge.s32.totalorder %s1921_s23, 2  ;;  %s40_s7 = sadd.s32 1, %s1917_s22 }
  0x16   : > { %p2029_p11 = pnand %p1634_p9, %p63_p1  ;;  %s1732_s8 = scalar_lea.vmem %s210_s30, 256 }
  0x17   : > { %p1733_p13 = scmp.ne.s32.totalorder %s210_s30, %s1732_s8  ;;  %p1740_p5 = scmp.lt.s32.totalorder %s210_s30, %s210_s30 }
  0x18   : > { %p1723_p12 = pneg %p2029_p11  ;;  %p1741_p7 = scmp.lt.s32.totalorder %s1732_s8, %s1732_s8 }
  0x1a   : > { %p1735_p0 = pnand %p1733_p13, %p1723_p12  ;;  %p1742_p2 = por %p1741_p7, %p1740_p5 }
  0x1c   : > { %p1736_p3 = pneg %p1735_p0 }
  0x1e   : > { %p1743_p6 = pnand %p1742_p2, %p1736_p3 }
  0x20   : > { %1746 = shalt.err (!%p1743_p6)
}
  0x21   : > { %s1924_s9 = smov 64   ;;  %s1925_s10 = smov 4  }
  0x22   : > { %s2311_s2 = sld [smem:[#allocation20_spill]]  ;;  %p42_p2 = scmp.ge.s32.totalorder %s40_s7, 2 }
  0x23   : > { %s49_s13 = sadd.s32 1, %s1909_s20  ;;  %p56_p6 = scmp.ne.s32.totalorder %s1909_s20, %s1905_s19 }
  0x24   : > { %p57_p9 = scmp.eq.s32.totalorder %s1921_s23, 0  ;;  %s2328_s7 = smov (%p42_p2, %s40_s7), 0 }
  0x25   : > { %2312 = sst [smem:[#allocation17_spill]] %s2328_s7  ;;  %p2314_p13 = scmp.eq.s32.totalorder %s2001_s24, 1 }
  0x26   : > { %p2047_p12 = por %p57_p9, %p56_p6  ;;  %s44_s16 = ssub.s32 %s1917_s22, %s2328_s7 }
  0x27   : > { %p2053_p0 = por %p2314_p13, %p56_p6  ;;  %p47_p3 = scmp.eq.s32.totalorder %s44_s16, 0 }
  0x28   : > { %1637 = dma.hbm_to_vmem [thread:$0]  (!%p2029_p11), %s2311_s2, 256, %s210_s30, [#allocation6], %s1924_s9, %s1924_s9, %s1925_s10  }
  0x29   : > { %p1653_p11 = scmp.lt.s32.totalorder %s1921_s23, 2  ;;  %s2061_s17 = sand.u32 1, %s1909_s20  }
  0x2a   : > { %s1583_s25 = sshll.u32 %s2061_s17, 3  ;;  %s1584_s30 = sshll.u32 %s1917_s22, 7 }
  0x2b   : > { %s2065_s29 = scalar_select %p47_p3, %s1909_s20, %s49_s13  }
  0x2c   : > { %s2317_s0 = sld [smem:[#allocation19_spill]]  ;;  %s230_s10 = scalar_lea.vmem [#allocation2], %s1583_s25 }
  0x2d   : > { %2316 = sst [smem:[#allocation18_spill]] %s2065_s29  ;;  %s238_s11 = sshll.u32 %s230_s10, 4  ;;  %s239_s11 = int_to_ptr.vmem [resolvable:$true] %s238_s11 }
  0x2e   : > { %p2073_p5 = pnand %p1653_p11, %p2047_p12  ;;  %s245_s16 = sand.u32 1, %s1921_s23  }
  0x2f   : > { %s1585_s2 = sshll.u32 %s2061_s17, 1  ;;  %s227_s7 = scalar_lea.sflag [#allocation3], %s2061_s17 }
  0x30   : > { %p1749_p7 = pneg %p2073_p5  ;;  %s1760_s13 = scalar_lea.vmem %s239_s11, 128 }
  0x31   : > { %p1761_p2 = scmp.ne.s32.totalorder %s239_s11, %s1760_s13  ;;  %s1926_s25 = smov [#allocation2]  }
  0x32   : > { %s236_s9 = scalar_lea.hbm %s2317_s0, %s1584_s30  ;;  %s1765_s30 = sshll.u32 %s1926_s25, 4  ;;  %s1766_s30 = int_to_ptr.vmem [resolvable:$false] %s1765_s30 }
  0x33   : > { %p1763_p6 = pnand %p1761_p2, %p1749_p7  ;;  %s1767_s14 = scalar_lea.vmem %s1766_s30, 256 }
  0x34   : > { %p1768_p12 = scmp.lt.s32.totalorder %s239_s11, %s1766_s30  ;;  %p1769_p13 = scmp.lt.s32.totalorder %s1767_s14, %s1760_s13 }
  0x35   : > { %p1764_p9 = pneg %p1763_p6 }
  0x36   : > { %p1770_p11 = por %p1769_p13, %p1768_p12 }
  0x38   : > { %p1771_p3 = pnand %p1770_p11, %p1764_p9 }
  0x3a   : > { %1774 = shalt.err (!%p1771_p3)
}
  0x3b   : > { %1641 = dma.hbm_to_vmem [thread:$0]  (!%p2073_p5), %s236_s9, 128, %s239_s11, %s227_s7  }
  0x3c   : > { %s1608_s17 = sshll.u32 %s1917_s22, 5  ;;  %s249_s0 = scalar_lea.vmem [#allocation5], %s1585_s2 }
  0x3d   : > { %s255_s10 = scalar_lea.hbm %s2297_s1, %s1608_s17  ;;  %s257_s29 = sshll.u32 %s249_s0, 4  ;;  %s258_s29 = int_to_ptr.vmem [resolvable:$true] %s257_s29 }
  0x3e   : > { %s246_s25 = scalar_lea.sflag [#allocation6], %s245_s16  ;;  %s1788_s20 = scalar_lea.vmem %s258_s29, 32 }
  0x3f   : > { %p1789_p2 = scmp.ne.s32.totalorder %s258_s29, %s1788_s20  ;;  %s1927_s13 = smov [#allocation5]  }
  0x40   : > { %s1793_s30 = sshll.u32 %s1927_s13, 4  ;;  %s1794_s30 = int_to_ptr.vmem [resolvable:$false] %s1793_s30 }
  0x41   : > { %p1791_p6 = pnand %p1789_p2, %p1749_p7  ;;  %s1795_s14 = scalar_lea.vmem %s1794_s30, 64 }
  0x42   : > { %p1796_p12 = scmp.lt.s32.totalorder %s258_s29, %s1794_s30  ;;  %p1797_p13 = scmp.lt.s32.totalorder %s1795_s14, %s1788_s20 }
  0x43   : > { %p1792_p9 = pneg %p1791_p6 }
  0x44   : > { %p1798_p11 = por %p1797_p13, %p1796_p12 }
  0x46   : > { %p1799_p3 = pnand %p1798_p11, %p1792_p9 }
  0x48   : > { %1802 = shalt.err (!%p1799_p3)
}
  0x49   : > { %1644 = dma.hbm_to_vmem [thread:$0]  (!%p2073_p5), %s255_s10, 32, %s258_s29, %s246_s25  }
  0x4a   : > { %266 = sbr.rel (%p2020_p8) target bundleno = 1184 (0x4a0), region = 36  ;;  %s2099_s0 = sand.u32 (!%p2020_p8), 1, %s1905_s19  }
  0x4b   : > { %s1589_s2 = sshll.u32 (!%p2020_p8), %s2099_s0, 3  ;;  %s269_s7 = scalar_lea.sflag (!%p2020_p8), [#allocation3], %s2099_s0 }
  0x4c   : > { %s272_s9 = scalar_lea.vmem (!%p2020_p8), [#allocation2], %s1589_s2 }
  0x4f   : > { %1880 = dma.done.wait (%p2010_p4), %s269_s7, 128  }
  0x50   : > { %1882 = vsyncadd (%p2010_p4), %s269_s7, 4294967168  ;;  %s277_s20 = sand.u32 1, %s2001_s24   ;;  %s1590_s28 = sshll.u32 %s2099_s0, 1 }
  0x51   : > { %s278_s29 = scalar_lea.sflag [#allocation6], %s277_s20  ;;  %s281_s11 = scalar_lea.vmem [#allocation5], %s1590_s28 }
  0x52   : > { %1884 = dma.done.wait (%p2010_p4), %s278_s29, 32  }
  0x53   : > { %1886 = vsyncadd (%p2010_p4), %s278_s29, 4294967264 }
  0x54   : > { %1888 = dma.done.wait (%p63_p1), [#allocation6], 256  }
  0x55   : > { %1890 = vsyncadd (%p63_p1), [#allocation6], 4294967040  ;;  %vm327_vm0 = vcmask 261120   ;;  %v326_v0 = vld [vmem:[%s272_s9] sm:$0xff]  ;;  %v343_v7 = vlaneseq  ;;  %v325_v10 = vld [vmem:[%s281_s11] sm:$0x3] }
  0x56   : > { %v328_v1 = vsel %vm327_vm0, %v326_v0, 0.0  ;;  %v1717_v11 = vld [vmem:[#allocation7 + $0x8] sm:$0xff]   ;;  %v1928_v13 = vmov 0.0   ;;  %v1718_v17 = vld [vmem:[#allocation7] sm:$0xff]   ;;  %v341_v18 = vadd.f32 1.0, %v325_v10  ;;  %vm1929_vm1 = vmmov 0  }
  0x57   : > { %329 = vadd.xlane.f32.xlu0 %v328_v1  ;;  %v344_v8 = vshrl.u32 %v343_v7, 7  ;;  %1614 = vmatprep.subr.bf16.mxu0 %v1928_v13  ;;  %s1930_s24 = smov 96   ;;  %v1594_v26 = vld [vmem:[%s2299_s3] ss:$0 sm:$0xff]  ;;  %s1931_s16 = smov 112   ;;  %vm1306_vm2 = vcmask 60416  }
  0x58   : > { %1615 = vmatpush3.bf16.msra.mxu0 %v1717_v11  ;;  %1618 = vmatprep.mubr.msk.bf16.mxu0 %vm1929_vm1, %v1928_v13  ;;  %s1932_s17 = smov 120   ;;  %s1933_s6 = smov 104   ;;  %v1934_v32 = vmov 1983009808   ;;  %v1935_v35 = vmov 1934713408  }
  0x59   : > { %v345_v9 = vsub.s32 0, %v344_v8  ;;  %1616 = vmatprep.subr.bf16.mxu0 %v1928_v13  ;;  %v441_v33 = vunpack.c.l.s4 %v1934_v32  ;;  %v473_v36 = vunpack.c.l.s4 %v1935_v35  ;;  %s1592_s8 = sshll.u32 %s2099_s0, 4  ;;  %s1609_s10 = sshll.u32 %s1913_s21, 8 }
  0x5a   : > { %s2190_s30 = scalar_lea.hbm %s2301_s5, %s1609_s10  ;;  %s321_s14 = scalar_lea.vmem [#allocation9], %s1592_s8 }
  0x5b   : > { %v358_v12 = vrot.slane %v325_v10, %v345_v9  ;;  %v346_v19 = vrot.slane %v341_v18, %v345_v9  ;;  %v442_v34 = vunpack.c.0.s8 %v441_v33  ;;  %v474_v40 = vunpack.c.0.s8 %v473_v36  ;;  %s1426_s2 = sshll.u32 %s321_s14, 4  ;;  %s1393_s7 = scalar_lea.sflag [#allocation10], %s2099_s0  ;;  %s2198_s2 = int_to_ptr.vmem [resolvable:$true] %s1426_s2 }
  0x5c   : > { %1617 = vmatpush3.bf16.msra.mxu0 %v1718_v17  ;;  %s1803_s9 = scalar_lea.vmem %s2198_s2, 256  ;;  %s1936_s20 = smov [#allocation9]  }
  0x5d   : > { %v2128_v39 = vsub.s32 %v442_v34, %v344_v8  ;;  %v2131_v46 = vsub.s32 %v474_v40, %v344_v8  ;;  %p1804_p1 = scmp.ne.s32.totalorder %s2198_s2, %s1803_s9  ;;  %s1807_s28 = sshll.u32 %s1936_s20, 4  ;;  %s1808_s28 = int_to_ptr.vmem [resolvable:$false] %s1807_s28 }
  0x5e   : > { %s1809_s29 = scalar_lea.vmem %s1808_s28, 512  ;;  %p1810_p5 = scmp.lt.s32.totalorder %s2198_s2, %s1808_s28 }
  0x5f   : > { %p1805_p4 = pnand %p1804_p1, %p2053_p0  ;;  %p1811_p7 = scmp.lt.s32.totalorder %s1809_s29, %s1803_s9 }
  0x61   : > { %p1806_p8 = pneg %p1805_p4  ;;  %p1812_p2 = por %p1811_p7, %p1810_p5 }
  0x63   : > { %p1813_p6 = pnand %p1812_p2, %p1806_p8 }
  0xe0   : > { %v330_v2 = vpop.xlane.xlu0 %329 }
  0xe1   : > { %v332_v3 = vmul.f32 0.03125, %v330_v2 }
  0xe3   : > { %v333_v4 = vsub.f32 %v326_v0, %v332_v3 }
  0xe5   : > { %v334_v5 = vmul.f32 %v333_v4, %v333_v4 }
  0xe7   : > { %v335_v6 = vsel %vm327_vm0, %v334_v5, 0.0 }
  0xe8   : > { %336 = vadd.xlane.f32.xlu0 %v335_v6 }
 0x171   : > { %v337_v14 = vpop.xlane.xlu0 %336 }
 0x172   : > { %v338_v15 = vmul.f32 0.03125, %v337_v14 }
 0x174   : > { %v339_v16 = vadd.f32 1e-06, %v338_v15 }
 0x176   : > { %1719 = vrsqrt.f32 %v339_v16 }
 0x183   : > { %v1720_v20 = vpop.eup %1719 }
 0x184   : > { %v348_v21 = vmul.f32 %v1720_v20, %v346_v19 }
 0x186   : > { %350 = vrot.lane.b32.xlu1 %v348_v21, %s1930_s24 }
 0x1f8   : > { %v351_v22 = vpop.permute.xlu1 %350 }
 0x1f9   : > { %v353_v23 = vmul.f32 %v351_v22, %v333_v4 }
 0x1fb   : > { %v360_v24 = vadd.f32 %v358_v12, %v353_v23 }
 0x1fd   : > { %v361_v25 = vpack.c.bf16 %v360_v24, %v360_v24 }
 0x1ff   : > { %1619 = vmatmul.mubr.msk.bf16.vlgmr.msra.gmra.mxu0 %vm327_vm0, %v361_v25 }
 0x2bf   : > { %v422_v27 = vpop.f32.mrf.mxu0 }
 0x2c0   : > { %v423_v28 = vadd.f32 %v1594_v26, %v422_v27 }
 0x2c1   : > { %v1620_v29 = vpop.f32.mrf.mxu0 }
 0x2c2   : > { %432 = vrot.lane.b32.xlu0 %v423_v28, %s1931_s16  ;;  %429 = vrot.lane.b32.xlu1 %v423_v28, %s1932_s17 }
 0x2c3   : > { %v425_v30 = vpop.f32.mrf.mxu0 }
 0x2c5   : > { %v1621_v31 = vpop.f32.mrf.mxu0 }
 0x2c6   : > { %435 = vrot.lane.b32.xlu1 %v423_v28, %s1933_s6 }
 0x334   : > { %v433_v37 = vpop.permute.xlu0 %432  ;;  %v430_v38 = vpop.permute.xlu1 %429 }
 0x335   : > { %508 = vrot.lane.b32.xlu1 %v430_v38, %s1930_s24  ;;  %v439_v41 = vcombine.high %v423_v28, %v433_v37  ;;  %v438_v43 = vcombine.low %v423_v28, %v433_v37 }
 0x337   : > { %v453_v48 = vrot.slane %v439_v41, %v2128_v39  ;;  %v446_v50 = vrot.slane %v438_v43, %v2128_v39 }
 0x338   : > { %v436_v42 = vpop.permute.xlu1 %435 }
 0x339   : > { %v454_v44 = vcombine.low %v430_v38, %v436_v42  ;;  %v455_v45 = vcombine.high %v430_v38, %v436_v42  ;;  %510 = vrot.lane.b32.xlu1 %v433_v37, %s1930_s24 }
 0x33b   : > { %v462_v47 = vrot.slane %v454_v44, %v2128_v39  ;;  %v469_v49 = vrot.slane %v455_v45, %v2128_v39 }
 0x33d   : > { %v486_v51 = vcombine.low %v453_v48, %v469_v49  ;;  %v487_v53 = vcombine.high %v453_v48, %v469_v49  ;;  %v470_v54 = vcombine.low %v446_v50, %v462_v47  ;;  %v471_v58 = vcombine.high %v446_v50, %v462_v47 }
 0x33f   : > { %v494_v52 = vrot.slane %v486_v51, %v2131_v46  ;;  %v501_v55 = vrot.slane %v487_v53, %v2131_v46  ;;  %v478_v56 = vrot.slane %v470_v54, %v2131_v46  ;;  %v485_v59 = vrot.slane %v471_v58, %v2131_v46 }
 0x341   : > { %714 = vxpose.xlu0.b32.start.end [1/1] (short) (narrow) %v494_v52, 8  ;;  %v502_v57 = vcombine.high %v478_v56, %v1928_v13  ;;  %v503_v60 = vcombine.high %v485_v59, %v1928_v13  ;;  %v504_v61 = vcombine.high %v494_v52, %v1928_v13  ;;  %v505_v62 = vcombine.high %v501_v55, %v1928_v13 }
 0x345   : > { %778 = vxpose.xlu0.b32.start.end [1/1] (short) (narrow) %v501_v55, 8 }
 0x349   : > { %618 = vxpose.xlu0.b32.start.end [1/1] (short) (narrow) %v502_v57, 8 }
 0x362   : > { %586 = vxpose.xlu1.b32.start.end [1/1] (short) (narrow) %v478_v56, 8 }
 0x366   : > { %650 = vxpose.xlu1.b32.start.end [1/1] (short) (narrow) %v485_v59, 8 }
 0x36a   : > { %682 = vxpose.xlu1.b32.start.end [1/1] (short) (narrow) %v503_v60, 8 }
 0x36e   : > { %746 = vxpose.xlu1.b32.start.end [1/1] (short) (narrow) %v504_v61, 8 }
 0x372   : > { %810 = vxpose.xlu1.b32.start.end [1/1] (short) (narrow) %v505_v62, 8  ;;  %506 = vrot.lane.b32.xlu0 %v423_v28, %s1930_s24 }
 0x390   : > { %512 = vrot.lane.b32.xlu1 %v436_v42, %s1930_s24 }
 0x3a7   : > { %v2147_v63 = vpop.permute.xlu1 %508 }
 0x3ab   : > { %v511_v0 = vpop.permute.xlu1 %510 }
 0x3bd   : > { %v730_v1 = vpop.trf.xlu0 }
 0x3c1   : > { %v794_v3 = vpop.trf.xlu0 }
 0x3c2   : > { %v874_v10 = vcombine.low %v730_v1, %v794_v3  ;;  %v875_v11 = vcombine.high %v730_v1, %v794_v3 }
 0x3c4   : > { %v882_v19 = vrot.slane %v874_v10, %v2128_v39  ;;  %v889_v20 = vrot.slane %v875_v11, %v2128_v39 }
 0x3c5   : > { %v634_v6 = vpop.trf.xlu0 }
 0x3de   : > { %v602_v2 = vpop.trf.xlu1 }
 0x3e2   : > { %v666_v4 = vpop.trf.xlu1 }
 0x3e3   : > { %v842_v9 = vcombine.low %v602_v2, %v666_v4  ;;  %v843_v15 = vcombine.high %v602_v2, %v666_v4 }
 0x3e4   : > { %v507_v47 = vpop.permute.xlu0 %506 }
 0x3e5   : > { %v850_v16 = vrot.slane %v842_v9, %v2128_v39  ;;  %v857_v25 = vrot.slane %v843_v15, %v2128_v39  ;;  %v518_v50 = vcombine.low %v507_v47, %v511_v0  ;;  %v519_v51 = vcombine.high %v507_v47, %v511_v0 }
 0x3e6   : > { %v698_v5 = vpop.trf.xlu1 }
 0x3e7   : > { %v858_v7 = vcombine.low %v634_v6, %v698_v5  ;;  %v859_v12 = vcombine.high %v634_v6, %v698_v5  ;;  %v526_v56 = vrot.slane %v518_v50, %v2128_v39  ;;  %v533_v57 = vrot.slane %v519_v51, %v2128_v39 }
 0x3e9   : > { %v866_v13 = vrot.slane %v858_v7, %v2128_v39  ;;  %v873_v21 = vrot.slane %v859_v12, %v2128_v39 }
 0x3ea   : > { %v762_v8 = vpop.trf.xlu1 }
 0x3eb   : > { %v906_v22 = vcombine.low %v850_v16, %v866_v13  ;;  %v907_v31 = vcombine.high %v850_v16, %v866_v13  ;;  %v922_v32 = vcombine.low %v857_v25, %v873_v21  ;;  %v923_v41 = vcombine.high %v857_v25, %v873_v21 }
 0x3ed   : > { %v914_v29 = vrot.slane %v906_v22, %v2131_v46  ;;  %v921_v38 = vrot.slane %v907_v31, %v2131_v46  ;;  %v930_v40 = vrot.slane %v922_v32, %v2131_v46  ;;  %v937_v45 = vrot.slane %v923_v41, %v2131_v46 }
 0x3ee   : > { %v826_v14 = vpop.trf.xlu1 }
 0x3ef   : > { %v890_v17 = vcombine.low %v762_v8, %v826_v14  ;;  %v891_v18 = vcombine.high %v762_v8, %v826_v14 }
 0x3f1   : > { %v898_v23 = vrot.slane %v890_v17, %v2128_v39  ;;  %v905_v24 = vrot.slane %v891_v18, %v2128_v39 }
 0x3f3   : > { %v938_v26 = vcombine.low %v882_v19, %v898_v23  ;;  %v939_v27 = vcombine.high %v882_v19, %v898_v23  ;;  %v954_v28 = vcombine.low %v889_v20, %v905_v24  ;;  %v955_v33 = vcombine.high %v889_v20, %v905_v24 }
 0x3f5   : > { %v946_v30 = vrot.slane %v938_v26, %v2131_v46  ;;  %v953_v36 = vrot.slane %v939_v27, %v2131_v46  ;;  %v962_v37 = vrot.slane %v954_v28, %v2131_v46  ;;  %v969_v44 = vrot.slane %v955_v33, %v2131_v46 }
 0x3f7   : > { %v971_v34 = vcombine.high %v914_v29, %v946_v30  ;;  %v970_v35 = vcombine.low %v914_v29, %v946_v30  ;;  %v972_v42 = vcombine.low %v921_v38, %v953_v36  ;;  %v975_v43 = vcombine.high %v930_v40, %v962_v37 }
 0x3f8   : > { %v973_v48 = vcombine.high %v921_v38, %v953_v36  ;;  %v977_v49 = vcombine.high %v937_v45, %v969_v44  ;;  %v974_v55 = vcombine.low %v930_v40, %v962_v37  ;;  %v976_v60 = vcombine.low %v937_v45, %v969_v44 }
 0x3f9   : > { %1010 = vxpose.xlu0.b32.start.end [1/1] (short) (narrow) %v971_v34, 8  ;;  %978 = vxpose.xlu1.b32.start.end [1/1] (short) (narrow) %v970_v35, 8 }
 0x3fd   : > { %1042 = vxpose.xlu0.b32.start.end [1/1] (short) (narrow) %v972_v42, 8  ;;  %1138 = vxpose.xlu1.b32.start.end [1/1] (short) (narrow) %v975_v43, 8 }
 0x401   : > { %1074 = vxpose.xlu0.b32.start.end [1/1] (short) (narrow) %v973_v48, 8  ;;  %1202 = vxpose.xlu1.b32.start.end [1/1] (short) (narrow) %v977_v49, 8 }
 0x402   : > { %v513_v52 = vpop.permute.xlu1 %512 }
 0x403   : > { %v534_v53 = vcombine.low %v2147_v63, %v513_v52  ;;  %v535_v54 = vcombine.high %v2147_v63, %v513_v52 }
 0x405   : > { %v542_v58 = vrot.slane %v534_v53, %v2128_v39  ;;  %v549_v59 = vrot.slane %v535_v54, %v2128_v39  ;;  %1106 = vxpose.xlu0.b32.start.end [1/1] (short) (narrow) %v974_v55, 8 }
 0x407   : > { %v550_v61 = vcombine.low %v526_v56, %v542_v58  ;;  %v551_v62 = vcombine.high %v526_v56, %v542_v58  ;;  %v566_v0 = vcombine.low %v533_v57, %v549_v59  ;;  %v567_v1 = vcombine.high %v533_v57, %v549_v59 }
 0x409   : > { %v558_v2 = vrot.slane %v550_v61, %v2131_v46  ;;  %v565_v3 = vrot.slane %v551_v62, %v2131_v46  ;;  %v574_v63 = vrot.slane %v566_v0, %v2131_v46  ;;  %v581_v4 = vrot.slane %v567_v1, %v2131_v46  ;;  %1170 = vxpose.xlu0.b32.start.end [1/1] (short) (narrow) %v976_v60, 8 }
 0x40b   : > { %v1311_v5 = vcombine.low %v558_v2, %v565_v3  ;;  %v1598_v6 = vcombine.high %v558_v2, %v565_v3  ;;  %v1327_v7 = vcombine.low %v574_v63, %v581_v4  ;;  %v1599_v8 = vcombine.high %v574_v63, %v581_v4 }
 0x40d   : > { %v1318_v9 = vrot.slane %v1311_v5, %v2128_v39  ;;  %v1326_v10 = vrot.slane %v1598_v6, %v2128_v39  ;;  %v1334_v11 = vrot.slane %v1327_v7, %v2128_v39  ;;  %v1342_v12 = vrot.slane %v1599_v8, %v2128_v39 }
 0x40f   : > { %v1343_v13 = vcombine.low %v1318_v9, %v1326_v10  ;;  %v1344_v14 = vcombine.high %v1318_v9, %v1326_v10  ;;  %v1359_v15 = vcombine.low %v1334_v11, %v1342_v12  ;;  %v1360_v16 = vcombine.high %v1334_v11, %v1342_v12 }
 0x411   : > { %v1351_v17 = vrot.slane %v1343_v13, %v2131_v46  ;;  %v1358_v18 = vrot.slane %v1344_v14, %v2131_v46  ;;  %v1367_v19 = vrot.slane %v1359_v15, %v2131_v46  ;;  %v1374_v20 = vrot.slane %v1360_v16, %v2131_v46 }
 0x413   : > { %v1375_v21 = vcombine.low %v1351_v17, %v1367_v19  ;;  %v1376_v22 = vcombine.high %v1351_v17, %v1367_v19  ;;  %v1377_v23 = vcombine.low %v1358_v18, %v1374_v20  ;;  %v1378_v24 = vcombine.high %v1358_v18, %v1374_v20 }
 0x415   : > { %v1379_v25 = vpack.c.bf16 %v1375_v21, %v1375_v21  ;;  %v1380_v26 = vpack.c.bf16 %v1376_v22, %v1376_v22  ;;  %v1381_v27 = vpack.c.bf16 %v1377_v23, %v1377_v23  ;;  %v1382_v28 = vpack.c.bf16 %v1378_v24, %v1378_v24 }
 0x417   : > { %1383 = vst.msk [vmem:[%s321_s14] sm:$0xf] %vm1306_vm2, %v1379_v25  ;;  %1384 = vst.msk [vmem:[%s321_s14 + $0x4] sm:$0xf] %vm1306_vm2, %v1380_v26 }
 0x418   : > { %1385 = vst.msk [vmem:[%s321_s14 + $0x8] sm:$0xf] %vm1306_vm2, %v1381_v27  ;;  %1386 = vst.msk [vmem:[%s321_s14 + $0xc] sm:$0xf] %vm1306_vm2, %v1382_v28 }
 0x419   : > { %1816 = shalt.err (!%p1813_p6)
}
 0x41a   : > { %s1817_s11 = scalar_lea.hbm %s2190_s30, 256  ;;  %s1821_s12 = scalar_lea.hbm %s2301_s5, 512 }
 0x41b   : > { %p1818_p9 = scmp.ne.s32.totalorder %s2190_s30, %s1817_s11  ;;  %p1822_p11 = scmp.lt.s32.totalorder %s2190_s30, %s2301_s5 }
 0x41c   : > { %p1823_p3 = scmp.lt.s32.totalorder %s1821_s12, %s1817_s11 }
 0x41d   : > { %p1819_p12 = pnand %p1818_p9, %p2053_p0 }
 0x41e   : > { %p1824_p1 = por %p1823_p3, %p1822_p11 }
 0x41f   : > { %p1820_p13 = pneg %p1819_p12 }
 0x421   : > { %p1825_p4 = pnand %p1824_p1, %p1820_p13 }
 0x423   : > { %1828 = shalt.err (!%p1825_p4)
}
 0x424   : > { %s1937_s6 = smov 64   ;;  %s1938_s25 = smov 4  }
 0x425   : > { %1631 = dma.vmem_to_hbm [thread:$0]  (%p2053_p0), %s2198_s2, 256, %s2190_s30, %s1393_s7, %s1937_s6, %s1937_s6, %s1938_s25  }
 0x426   : > { %s314_s13 = scalar_lea.vmem [#allocation8], %s1592_s8  ;;  %s2241_s7 = scalar_lea.hbm %s2300_s4, %s1609_s10 }
 0x427   : > { %s1408_s30 = sshll.u32 %s314_s13, 4  ;;  %s1388_s8 = scalar_lea.sflag [#allocation4], %s2099_s0  ;;  %s2243_s30 = int_to_ptr.vmem [resolvable:$true] %s1408_s30 }
 0x428   : > { %s1829_s21 = scalar_lea.vmem %s2243_s30, 256  ;;  %s1939_s10 = smov [#allocation8]  }
 0x429   : > { %p1830_p8 = scmp.ne.s32.totalorder %s2243_s30, %s1829_s21  ;;  %s1833_s9 = sshll.u32 %s1939_s10, 4  ;;  %s1834_s9 = int_to_ptr.vmem [resolvable:$false] %s1833_s9 }
 0x42a   : > { %s1835_s20 = scalar_lea.vmem %s1834_s9, 512  ;;  %p1836_p2 = scmp.lt.s32.totalorder %s2243_s30, %s1834_s9 }
 0x42b   : > { %p1831_p5 = pnand %p1830_p8, %p2053_p0  ;;  %p1837_p6 = scmp.lt.s32.totalorder %s1835_s20, %s1829_s21 }
 0x42d   : > { %p1832_p7 = pneg %p1831_p5  ;;  %p1838_p9 = por %p1837_p6, %p1836_p2 }
 0x42f   : > { %p1839_p12 = pnand %p1838_p9, %p1832_p7 }
 0x475   : > { %v1026_v29 = vpop.trf.xlu0  ;;  %v994_v30 = vpop.trf.xlu1 }
 0x479   : > { %v1058_v31 = vpop.trf.xlu0  ;;  %v1154_v32 = vpop.trf.xlu1 }
 0x47a   : > { %v1234_v37 = vcombine.low %v994_v30, %v1058_v31 }
 0x47c   : > { %v1241_v42 = vrot.slane %v1234_v37, %v2128_v39 }
 0x47d   : > { %v1090_v33 = vpop.trf.xlu0  ;;  %v1218_v36 = vpop.trf.xlu1 }
 0x47e   : > { %v1242_v34 = vcombine.low %v1026_v29, %v1090_v33  ;;  %v1258_v40 = vcombine.low %v1154_v32, %v1218_v36 }
 0x480   : > { %v1249_v38 = vrot.slane %v1242_v34, %v2128_v39  ;;  %v1265_v47 = vrot.slane %v1258_v40, %v2128_v39 }
 0x481   : > { %v1122_v35 = vpop.trf.xlu0 }
 0x482   : > { %v1266_v44 = vcombine.low %v1241_v42, %v1249_v38  ;;  %v1267_v45 = vcombine.high %v1241_v42, %v1249_v38 }
 0x484   : > { %v1274_v51 = vrot.slane %v1266_v44, %v2131_v46  ;;  %v1281_v52 = vrot.slane %v1267_v45, %v2131_v46 }
 0x485   : > { %v1186_v41 = vpop.trf.xlu0 }
 0x486   : > { %v1250_v43 = vcombine.low %v1122_v35, %v1186_v41 }
 0x488   : > { %v1257_v48 = vrot.slane %v1250_v43, %v2128_v39 }
 0x48a   : > { %v1282_v49 = vcombine.low %v1257_v48, %v1265_v47  ;;  %v1283_v50 = vcombine.high %v1257_v48, %v1265_v47 }
 0x48c   : > { %v1290_v53 = vrot.slane %v1282_v49, %v2131_v46  ;;  %v1297_v54 = vrot.slane %v1283_v50, %v2131_v46 }
 0x48e   : > { %v1298_v55 = vcombine.low %v1274_v51, %v1290_v53  ;;  %v1299_v56 = vcombine.high %v1274_v51, %v1290_v53  ;;  %v1300_v57 = vcombine.low %v1281_v52, %v1297_v54  ;;  %v1301_v39 = vcombine.high %v1281_v52, %v1297_v54 }
 0x490   : > { %v1302_v58 = vpack.c.bf16 %v1298_v55, %v1298_v55  ;;  %v1303_v59 = vpack.c.bf16 %v1299_v56, %v1299_v56  ;;  %v1304_v60 = vpack.c.bf16 %v1300_v57, %v1300_v57  ;;  %v1305_v61 = vpack.c.bf16 %v1301_v39, %v1301_v39 }
 0x492   : > { %1307 = vst.msk [vmem:[%s314_s13] sm:$0xf] %vm1306_vm2, %v1302_v58  ;;  %1308 = vst.msk [vmem:[%s314_s13 + $0x4] sm:$0xf] %vm1306_vm2, %v1303_v59 }
 0x493   : > { %1309 = vst.msk [vmem:[%s314_s13 + $0x8] sm:$0xf] %vm1306_vm2, %v1304_v60  ;;  %1310 = vst.msk [vmem:[%s314_s13 + $0xc] sm:$0xf] %vm1306_vm2, %v1305_v61 }
 0x494   : > { %1842 = shalt.err (!%p1839_p12)
}
 0x495   : > { %s1843_s28 = scalar_lea.hbm %s2241_s7, 256  ;;  %s1847_s11 = scalar_lea.hbm %s2300_s4, 512 }
 0x496   : > { %p1844_p13 = scmp.ne.s32.totalorder %s2241_s7, %s1843_s28  ;;  %p1848_p1 = scmp.lt.s32.totalorder %s2241_s7, %s2300_s4 }
 0x497   : > { %p1849_p4 = scmp.lt.s32.totalorder %s1847_s11, %s1843_s28 }
 0x498   : > { %p1845_p11 = pnand %p1844_p13, %p2053_p0 }
 0x499   : > { %p1850_p8 = por %p1849_p4, %p1848_p1 }
 0x49a   : > { %p1846_p3 = pneg %p1845_p11 }
 0x49c   : > { %p1851_p5 = pnand %p1850_p8, %p1846_p3 }
 0x49e   : > { %1854 = shalt.err (!%p1851_p5)
}
 0x49f   : > { %1630 = dma.vmem_to_hbm [thread:$0]  (%p2053_p0), %s2243_s30, 256, %s2241_s7, %s1388_s8, %s1937_s6, %s1937_s6, %s1938_s25  }
 0x4a0 PF: > { %s1441_s12 = sand.u32 1, %s1901_s18   ;;  %p2319_p7 = scmp.ne.s32.totalorder %s2308_s27, 0 }
 0x4a1   : > { %s1442_s16 = scalar_lea.sflag [#allocation4], %s1441_s12 }
 0x4a2   : > { %p1646_p2 = pnand %p1582_p10, %p2319_p7 }
 0x4a4   : > { %p1647_p6 = pneg %p1646_p2 }
 0x4a6   : > { %1892 = dma.done.wait (%p1647_p6), %s1442_s16, 256  }
 0x4a7   : > { %1894 = vsyncadd (%p1647_p6), %s1442_s16, 4294967040  ;;  %s1451_s17 = scalar_lea.sflag [#allocation10], %s1441_s12 }
 0x4a8   : > { %1896 = dma.done.wait (%p1647_p6), %s1451_s17, 256  }
 0x4a9   : > { %1898 = vsyncadd (%p1647_p6), %s1451_s17, 4294967040  ;;  %s28_s23 = sadd.s32 1, %s1921_s23   ;;  %s2320_s15 = sld [smem:[#allocation16_spill]] }
 0x4aa   : > { %p25_p9 = scmp.ge.s32.totalorder %s28_s23, 4   ;;  %s2321_s20 = sld [smem:[#allocation18_spill]] }
 0x4ab   : > { %s2322_s6 = sld [smem:[#allocation17_spill]]  ;;  %s2323_s18 = smov %s1905_s19 }
 0x4ac   : > { %s2325_s21 = smov %s1917_s22 }
 0x4ad   :  { %27 = sbr.rel (!%p25_p9) target bundleno = 13 (0xd), region = 115 }
 0x4af   : > { %s2324_s19 = smov %s2320_s15 }
 0x4b1   : > { %s2326_s22 = smov %s2322_s6 }
 0x4b2   :  { %1456 = vsyncpa [#allocation3], 1 }
 0x4b3   :  { %1458 = vsyncpa [#allocation3 + $0x1], 1 }
 0x4b4   :  { %1459 = vsyncpa [#allocation6], 1 }
 0x4b5   :  { %1461 = vsyncpa [#allocation6 + $0x1], 1 }
 0x4b6   :  { %1462 = vsyncpa [#allocation4], 1 }
 0x4b7   :  { %1464 = vsyncpa [#allocation4 + $0x1], 1 }
 0x4b8   :  { %1465 = vsyncpa [#allocation10], 1 }
 0x4b9   :  { %1467 = vsyncpa [#allocation10 + $0x1], 1 }

</bundles_post_ra>
